<compile_context>
chip_gen: v7x
topology: tpu7x:2x2x1
jax: 0.10.0
libtpu: 0.0.40
codegen_flags: <defaults>
</compile_context>

<pallas_src>
import jax
import jax.numpy as jnp
from jax.experimental import pallas as pl
from jax.experimental.pallas import tpu as pltpu

# ----------------------------- configuration --------------------------------
B = 2        # batchSize
L = 16       # seqLen
S = 4        # slotType
H = 32       # hidden_size
F = 64       # FFN intermediate size
V = 6        # maxSlotValue
VOCAB = 50
NEG = 1e9
EPS = 1e-12
TOT = 2 + 2 * L + V + 2   # packed output: prob(2)|start(L)|end(L)|val(V)|ext(1)|cls(1)


# ----------------------------- in-kernel helpers -----------------------------
def _mm(a, b):
    return jnp.dot(a, b, preferred_element_type=jnp.float32)


def _mm_t(a, b):
    # A @ B.T without an explicit transpose (contract last dims of both).
    return jax.lax.dot_general(a, b, (((1,), (1,)), ((), ())),
                               preferred_element_type=jnp.float32)


def _layernorm(x, g, b):
    mu = jnp.mean(x, axis=-1, keepdims=True)
    var = jnp.mean((x - mu) ** 2, axis=-1, keepdims=True)
    return (x - mu) * jax.lax.rsqrt(var + EPS) * g + b


def _softmax(x):
    m = jnp.max(x, axis=-1, keepdims=True)
    e = jnp.exp(x - m)
    return e * pl.reciprocal(jnp.sum(e, axis=-1, keepdims=True), approx=True)


# ----------------------------- fused kernel ----------------------------------
def _dss_fused_kernel(slotpos_ref,                       # SMEM [B,S] (scalar prefetch)
                      x_ref, masks_ref, schema_ref,
                      ln_ref, w_qkvo_ref, b_qkvo_ref, w1_ref, w2_ref, b_ffn_ref,
                      w_cross_ref, w_se_ref, w_heads_ref, b_heads_ref,
                      out_ref):
    b = pl.program_id(0)
    scale = jax.lax.rsqrt(jnp.float32(H))

    # additive masks, computed once per grid step
    masks = masks_ref[0]                           # [3, L]
    add_att = (masks[0:1] - 1.0) * NEG             # attentionMask
    add_sent = (masks[1:2] - 1.0) * NEG            # mask_sentences
    add_ans = (masks[2:3] - 1.0) * NEG             # mask_answerArea

    ln = ln_ref[...]                               # [8, H]  gamma/beta rows

    # ------------------- Encoder (one transformer layer) -------------------
    x = _layernorm(x_ref[0], ln[0:1], ln[1:2])     # [L, H]
    w_qkvo = w_qkvo_ref[...]                       # [H, 4H]
    b_qkvo = b_qkvo_ref[...]                       # [1, 4H]
    qkv = _mm(x, w_qkvo[:, :3 * H]) + b_qkvo[:, :3 * H]       # [L, 3H]
    q = qkv[:, :H]
    k = qkv[:, H:2 * H]
    v = qkv[:, 2 * H:]
    attn = _softmax(_mm_t(q, k) * scale + add_att)            # [L, L]
    ctx = _mm(attn, v)                                        # [L, H]
    attn_out = _mm(ctx, w_qkvo[:, 3 * H:]) + b_qkvo[:, 3 * H:]
    h = _layernorm(x + attn_out, ln[2:3], ln[3:4])
    b_ffn = b_ffn_ref[...]                                    # [1, F+H]
    # TODO(synk): PyTorch nn.GELU default is exact erf; tanh approximation kept
    #             here for guaranteed TPU lowering (tiny numerical difference).
    ff = _mm(jax.nn.gelu(_mm(h, w1_ref[...]) + b_ffn[:, :F], approximate=True),
             w2_ref[...]) + b_ffn[:, F:]
    sent_h = _layernorm(h + ff, ln[4:5], ln[5:6])             # sentencesHiddenStates [L,H]

    # --------- in-kernel slot gather: one-hot(slotPosition) @ sent_h --------
    col = jax.lax.broadcasted_iota(jnp.int32, (S, L), 1)
    row = jax.lax.broadcasted_iota(jnp.int32, (S, L), 0)
    onehot = jnp.zeros((S, L), jnp.float32)
    for s in range(S):
        onehot = onehot + jnp.where((row == s) & (col == slotpos_ref[b, s]),
                                    1.0, 0.0)
    slot_h = _mm(onehot, sent_h)                              # slotsHiddenStates [S,H]

    # --------------- SentencesSlotCrossEncoder (slots -> sentences) ---------
    w_c = w_cross_ref[...]                                    # [H, 4H]
    q_s = _mm(slot_h, w_c[:, :H])                             # [S, H]
    kv_c = _mm(sent_h, w_c[:, H:3 * H])                       # [L, 2H]
    attn_c = _softmax(_mm_t(q_s, kv_c[:, :H]) * scale + add_sent)   # [S, L]
    ctx_c = _mm(attn_c, kv_c[:, H:])                          # [S, H]
    ss = _layernorm(slot_h + _mm(ctx_c, w_c[:, 3 * H:]),
                    ln[6:7], ln[7:8])                         # sentencesSlots [S,H]

    # ------------- Preliminary + Ultimate heads (one packed matmul) ---------
    heads = _mm(ss, w_heads_ref[...]) + b_heads_ref[...]      # [S, 2+V+2]
    prob_update = _softmax(heads[:, 0:2])                     # [S, 2]
    schema = schema_ref[...]                                  # [S, V+1]
    val_prob = _softmax(heads[:, 2:2 + V] + (schema[:, :V] - 1.0) * NEG)  # [S, V]
    ext = jax.nn.sigmoid(heads[:, 2 + V:3 + V])               # [S, 1]
    cflag = schema[:, V:V + 1]                                # [S, 1] 1 = categorical
    cls = jax.nn.sigmoid(heads[:, 3 + V:4 + V]) * cflag + (1.0 - cflag)

    # bilinear start/end span scores
    query = slot_h + ss                                       # [S, H]
    se = _mm(query, w_se_ref[...])                            # [S, 2H]
    start_p = _softmax(_mm_t(se[:, :H], sent_h) * scale + add_ans)   # [S, L]
    end_p = _softmax(_mm_t(se[:, H:], sent_h) * scale + add_ans)     # [S, L]

    # single packed output slab [S, TOT]
    out_ref[0, :, 0:2] = prob_update
    out_ref[0, :, 2:2 + L] = start_p
    out_ref[0, :, 2 + L:2 + 2 * L] = end_p
    out_ref[0, :, 2 + 2 * L:2 + 2 * L + V] = val_prob
    out_ref[0, :, 2 + 2 * L + V:3 + 2 * L + V] = ext
    out_ref[0, :, 3 + 2 * L + V:4 + 2 * L + V] = cls


# ----------------------------- pallas_call wrapper ---------------------------
def run_dss_fused(slotPosition, x_emb, masks, schema, weights):
    def bspec(shape):
        n = len(shape)
        return pl.BlockSpec(shape, lambda b, sp, n=n: (b,) + (0,) * (n - 1))

    def rspec(arr):
        n = arr.ndim
        return pl.BlockSpec(arr.shape, lambda b, sp, n=n: (0,) * n)

    in_specs = ([bspec((1, L, H)), bspec((1, 3, L)), rspec(schema)]
                + [rspec(w) for w in weights])

    grid_spec = pltpu.PrefetchScalarGridSpec(
        num_scalar_prefetch=1,
        grid=(B,),
        in_specs=in_specs,
        out_specs=pl.BlockSpec((1, S, TOT), lambda b, sp: (b, 0, 0)),
    )
    return pl.pallas_call(
        _dss_fused_kernel,
        grid_spec=grid_spec,
        out_shape=jax.ShapeDtypeStruct((B, S, TOT), jnp.float32),
        compiler_params=pltpu.CompilerParams(
            dimension_semantics=("parallel",)),
    )(slotPosition, x_emb, masks, schema, *weights)


# ----------------------------- parameters ------------------------------------
def init_params(key):
    keys = iter(jax.random.split(key, 16))
    nrm = lambda shape: 0.02 * jax.random.normal(next(keys), shape, jnp.float32)

    emb = dict(word=nrm((VOCAB, H)), pos=nrm((L, H)), seg=nrm((2, H)))

    # 8 LayerNorm rows: enc ln0 (g,b), ln1 (g,b), ln2 (g,b), cross ln (g,b)
    ln_all = jnp.tile(
        jnp.concatenate([jnp.ones((1, H), jnp.float32),
                         jnp.zeros((1, H), jnp.float32)], axis=0), (4, 1))

    weights = (
        ln_all,                                   # [8, H]
        nrm((H, 4 * H)),                          # encoder wq|wk|wv|wo  [32,128]
        jnp.zeros((1, 4 * H), jnp.float32),       # encoder bq|bk|bv|bo
        nrm((H, F)),                              # FFN w1
        nrm((F, H)),                              # FFN w2
        jnp.zeros((1, F + H), jnp.float32),       # FFN b1|b2
        nrm((H, 4 * H)),                          # cross wq|wk|wv|wo    [32,128]
        nrm((H, 2 * H)),                          # ultimate w_start|w_end [32,64]
        nrm((H, 2 + V + 2)),                      # prelim wp | w_val | w_ext | w_cls
        jnp.zeros((1, 2 + V + 2), jnp.float32),   # packed head biases
    )

    # schema (deterministic, synthetic): slots 0,1 categorical; 2,3 extractive
    mask_cateSlot = jnp.array([[1.0, 1.0, 0.0, 0.0]], jnp.float32)       # [1, S]
    mask_cate_value = jnp.array([[1, 1, 1, 0, 0, 0],
                                 [1, 1, 1, 1, 0, 0],
                                 [1, 0, 0, 0, 0, 0],
                                 [1, 0, 0, 0, 0, 0]], jnp.float32)       # [S, V]
    schema = jnp.concatenate([mask_cate_value, mask_cateSlot.T], axis=1)  # [S, V+1]
    return dict(emb=emb, weights=weights, schema=schema)


# ----------------------------- DSS forward -----------------------------------
@jax.jit
def dss_forward(params, sentencesTokens, attentionMask, segmentEmbedding,
                slotPosition, mask_sentences):
    emb = params["emb"]
    # TODO(synk): embedding-table lookups (vocab/segment gathers) stay in XLA.
    x = (emb["word"][sentencesTokens]
         + emb["pos"][None, :, :]
         + emb["seg"][segmentEmbedding]).astype(jnp.float32)

    am = attentionMask.astype(jnp.float32)
    sm = mask_sentences.astype(jnp.float32)
    ansm = sm.at[:, 0].set(1.0)                   # mask_answerArea
    masks = jnp.stack([am, sm, ansm], axis=1)     # [B, 3, L]

    out = run_dss_fused(slotPosition.astype(jnp.int32), x, masks,
                        params["schema"], params["weights"])

    prob_update = out[:, :, 0:2]
    pre_score = prob_update[:, :, 1]
    startProb = out[:, :, 2:2 + L]
    endProb = out[:, :, 2 + L:2 + 2 * L]
    slotValueProb = out[:, :, 2 + 2 * L:2 + 2 * L + V]
    extUltScore = out[:, :, 2 + 2 * L + V]
    clsUltScore = out[:, :, 3 + 2 * L + V]
    return (prob_update, pre_score, startProb, endProb, slotValueProb,
            extUltScore, clsUltScore)


# ----------------------------- main -------------------------------------------
if __name__ == "__main__":
    key = jax.random.PRNGKey(0)
    k_param, k_tok = jax.random.split(key)

    params = init_params(k_param)

    sentencesTokens = jax.random.randint(k_tok, (B, L), 0, VOCAB, jnp.int32)
    attentionMask = jnp.ones((B, L), jnp.float32).at[1, L - 3:].set(0.0)
    segmentEmbedding = jnp.concatenate(
        [jnp.zeros((B, L // 2), jnp.int32), jnp.ones((B, L // 2), jnp.int32)],
        axis=1)
    slotPosition = jnp.array([[1, 3, 5, 7], [2, 4, 6, 8]], jnp.int32)

    mask_sentences = attentionMask
    batch_idx = jnp.arange(B)[:, None]
    mask_sentences = mask_sentences.at[batch_idx, slotPosition].set(0.0)

    outs = dss_forward(params, sentencesTokens, attentionMask,
                       segmentEmbedding, slotPosition, mask_sentences)
    outs = jax.block_until_ready(outs)

    (prob_update, pre_score, startProb, endProb, slotValueProb,
     extUltScore, clsUltScore) = outs
    assert prob_update.shape == (B, S, 2)
    assert pre_score.shape == (B, S)
    assert startProb.shape == (B, S, L)
    assert endProb.shape == (B, S, L)
    assert slotValueProb.shape == (B, S, V)
    assert extUltScore.shape == (B, S)
    assert clsUltScore.shape == (B, S)
    assert all(bool(jnp.all(jnp.isfinite(o))) for o in outs)

    print("KERNEL_OK")
</pallas_src>

<mosaic_0001>
module attributes {stable_mosaic.version = 11 : i64} {
  func.func @_dss_fused_kernel(%arg0: i32, %arg1: memref<2x4xi32, #tpu.memory_space<smem>>, %arg2: memref<1x16x32xf32, #tpu.memory_space<vmem>>, %arg3: memref<1x3x16xf32, #tpu.memory_space<vmem>>, %arg4: memref<4x7xf32, #tpu.memory_space<vmem>>, %arg5: memref<8x32xf32, #tpu.memory_space<vmem>>, %arg6: memref<32x128xf32, #tpu.memory_space<vmem>>, %arg7: memref<1x128xf32, #tpu.memory_space<vmem>>, %arg8: memref<32x64xf32, #tpu.memory_space<vmem>>, %arg9: memref<64x32xf32, #tpu.memory_space<vmem>>, %arg10: memref<1x96xf32, #tpu.memory_space<vmem>>, %arg11: memref<32x128xf32, #tpu.memory_space<vmem>>, %arg12: memref<32x64xf32, #tpu.memory_space<vmem>>, %arg13: memref<32x10xf32, #tpu.memory_space<vmem>>, %arg14: memref<1x10xf32, #tpu.memory_space<vmem>>, %arg15: memref<1x4x42xf32, #tpu.memory_space<vmem>>) attributes {dimension_semantics = [#tpu.dimension_semantics<parallel>], iteration_bounds = array<i64: 2>, scalar_prefetch = 1 : i64, scratch_operands = 0 : i64, tpu.core_type = #tpu.core_type<tc>, window_params = [{transform_indices = @transform_0, window_bounds = array<i64: 1, 16, 32>}, {transform_indices = @transform_1, window_bounds = array<i64: 1, 3, 16>}, {pipeline_mode = #tpu.pipeline_mode<synchronous>, transform_indices = @transform_2, window_bounds = array<i64: 4, 7>}, {pipeline_mode = #tpu.pipeline_mode<synchronous>, transform_indices = @transform_3, window_bounds = array<i64: 8, 32>}, {pipeline_mode = #tpu.pipeline_mode<synchronous>, transform_indices = @transform_4, window_bounds = array<i64: 32, 128>}, {pipeline_mode = #tpu.pipeline_mode<synchronous>, transform_indices = @transform_5, window_bounds = array<i64: 1, 128>}, {pipeline_mode = #tpu.pipeline_mode<synchronous>, transform_indices = @transform_6, window_bounds = array<i64: 32, 64>}, {pipeline_mode = #tpu.pipeline_mode<synchronous>, transform_indices = @transform_7, window_bounds = array<i64: 64, 32>}, {pipeline_mode = #tpu.pipeline_mode<synchronous>, transform_indices = @transform_8, window_bounds = array<i64: 1, 96>}, {pipeline_mode = #tpu.pipeline_mode<synchronous>, transform_indices = @transform_9, window_bounds = array<i64: 32, 128>}, {pipeline_mode = #tpu.pipeline_mode<synchronous>, transform_indices = @transform_10, window_bounds = array<i64: 32, 64>}, {pipeline_mode = #tpu.pipeline_mode<synchronous>, transform_indices = @transform_11, window_bounds = array<i64: 32, 10>}, {pipeline_mode = #tpu.pipeline_mode<synchronous>, transform_indices = @transform_12, window_bounds = array<i64: 1, 10>}, {transform_indices = @transform_13, window_bounds = array<i64: 1, 4, 42>}]} {
    %cst = arith.constant 3.200000e+01 : f32
    %0 = math.rsqrt %cst : f32
    %c0 = arith.constant 0 : index
    %c0_0 = arith.constant 0 : index
    %c0_1 = arith.constant 0 : index
    %1 = vector.load %arg3[%c0, %c0_0, %c0_1] : memref<1x3x16xf32, #tpu.memory_space<vmem>>, vector<1x3x16xf32>
    %2 = vector.shape_cast %1 : vector<1x3x16xf32> to vector<3x16xf32>
    %3 = vector.extract_strided_slice %2 {offsets = [0, 0], sizes = [1, 16], strides = [1, 1]} : vector<3x16xf32> to vector<1x16xf32>
    %cst_2 = arith.constant 1.000000e+00 : f32
    %4 = vector.broadcast %cst_2 : f32 to vector<1x16xf32>
    %5 = arith.subf %3, %4 : vector<1x16xf32>
    %cst_3 = arith.constant 1.000000e+09 : f32
    %6 = vector.broadcast %cst_3 : f32 to vector<1x16xf32>
    %7 = arith.mulf %5, %6 : vector<1x16xf32>
    %8 = vector.extract_strided_slice %2 {offsets = [1, 0], sizes = [1, 16], strides = [1, 1]} : vector<3x16xf32> to vector<1x16xf32>
    %cst_4 = arith.constant 1.000000e+00 : f32
    %9 = vector.broadcast %cst_4 : f32 to vector<1x16xf32>
    %10 = arith.subf %8, %9 : vector<1x16xf32>
    %cst_5 = arith.constant 1.000000e+09 : f32
    %11 = vector.broadcast %cst_5 : f32 to vector<1x16xf32>
    %12 = arith.mulf %10, %11 : vector<1x16xf32>
    %13 = vector.extract_strided_slice %2 {offsets = [2, 0], sizes = [1, 16], strides = [1, 1]} : vector<3x16xf32> to vector<1x16xf32>
    %cst_6 = arith.constant 1.000000e+00 : f32
    %14 = vector.broadcast %cst_6 : f32 to vector<1x16xf32>
    %15 = arith.subf %13, %14 : vector<1x16xf32>
    %cst_7 = arith.constant 1.000000e+09 : f32
    %16 = vector.broadcast %cst_7 : f32 to vector<1x16xf32>
    %17 = arith.mulf %15, %16 : vector<1x16xf32>
    %c0_8 = arith.constant 0 : index
    %c0_9 = arith.constant 0 : index
    %18 = vector.load %arg5[%c0_8, %c0_9] : memref<8x32xf32, #tpu.memory_space<vmem>>, vector<8x32xf32>
    %c0_10 = arith.constant 0 : index
    %c0_11 = arith.constant 0 : index
    %c0_12 = arith.constant 0 : index
    %19 = vector.load %arg2[%c0_10, %c0_11, %c0_12] : memref<1x16x32xf32, #tpu.memory_space<vmem>>, vector<1x16x32xf32>
    %20 = vector.shape_cast %19 : vector<1x16x32xf32> to vector<16x32xf32>
    %21 = vector.extract_strided_slice %18 {offsets = [0, 0], sizes = [1, 32], strides = [1, 1]} : vector<8x32xf32> to vector<1x32xf32>
    %22 = vector.extract_strided_slice %18 {offsets = [1, 0], sizes = [1, 32], strides = [1, 1]} : vector<8x32xf32> to vector<1x32xf32>
    %cst_13 = arith.constant dense<0.000000e+00> : vector<16xf32>
    %23 = vector.multi_reduction <add>, %20, %cst_13 [1] : vector<16x32xf32> to vector<16xf32>
    %24 = vector.shape_cast %23 : vector<16xf32> to vector<16x1xf32>
    %cst_14 = arith.constant 3.200000e+01 : f32
    %25 = vector.broadcast %cst_14 : f32 to vector<16x1xf32>
    %26 = arith.divf %24, %25 : vector<16x1xf32>
    %27 = vector.broadcast %26 : vector<16x1xf32> to vector<16x32xf32>
    %28 = arith.subf %20, %27 : vector<16x32xf32>
    %29 = arith.mulf %28, %28 : vector<16x32xf32>
    %cst_15 = arith.constant dense<0.000000e+00> : vector<16xf32>
    %30 = vector.multi_reduction <add>, %29, %cst_15 [1] : vector<16x32xf32> to vector<16xf32>
    %31 = vector.shape_cast %30 : vector<16xf32> to vector<16x1xf32>
    %cst_16 = arith.constant 3.200000e+01 : f32
    %32 = vector.broadcast %cst_16 : f32 to vector<16x1xf32>
    %33 = arith.divf %31, %32 : vector<16x1xf32>
    %34 = vector.broadcast %26 : vector<16x1xf32> to vector<16x32xf32>
    %35 = arith.subf %20, %34 : vector<16x32xf32>
    %cst_17 = arith.constant 9.99999996E-13 : f32
    %36 = vector.broadcast %cst_17 : f32 to vector<16x1xf32>
    %37 = arith.addf %33, %36 : vector<16x1xf32>
    %38 = math.rsqrt %37 : vector<16x1xf32>
    %39 = vector.broadcast %38 : vector<16x1xf32> to vector<16x32xf32>
    %40 = arith.mulf %35, %39 : vector<16x32xf32>
    %41 = vector.broadcast %21 : vector<1x32xf32> to vector<16x32xf32>
    %42 = arith.mulf %40, %41 : vector<16x32xf32>
    %43 = vector.broadcast %22 : vector<1x32xf32> to vector<16x32xf32>
    %44 = arith.addf %42, %43 : vector<16x32xf32>
    %c0_18 = arith.constant 0 : index
    %c0_19 = arith.constant 0 : index
    %45 = vector.load %arg6[%c0_18, %c0_19] : memref<32x128xf32, #tpu.memory_space<vmem>>, vector<32x128xf32>
    %c0_20 = arith.constant 0 : index
    %c0_21 = arith.constant 0 : index
    %46 = vector.load %arg7[%c0_20, %c0_21] : memref<1x128xf32, #tpu.memory_space<vmem>>, vector<1x128xf32>
    %47 = vector.extract_strided_slice %45 {offsets = [0, 0], sizes = [32, 96], strides = [1, 1]} : vector<32x128xf32> to vector<32x96xf32>
    %cst_22 = arith.constant dense<0.000000e+00> : vector<16x96xf32>
    %48 = tpu.matmul %44, %47, %cst_22 {dimension_numbers = #tpu.dot_dimension_numbers<[1], [0], [0], [1], [0, 0, 1, 1], [], []>} : vector<16x32xf32>, vector<32x96xf32>, vector<16x96xf32> -> vector<16x96xf32>
    %49 = vector.extract_strided_slice %46 {offsets = [0, 0], sizes = [1, 96], strides = [1, 1]} : vector<1x128xf32> to vector<1x96xf32>
    %50 = vector.broadcast %49 : vector<1x96xf32> to vector<16x96xf32>
    %51 = arith.addf %48, %50 : vector<16x96xf32>
    %52 = vector.extract_strided_slice %51 {offsets = [0, 0], sizes = [16, 32], strides = [1, 1]} : vector<16x96xf32> to vector<16x32xf32>
    %53 = vector.extract_strided_slice %51 {offsets = [0, 32], sizes = [16, 32], strides = [1, 1]} : vector<16x96xf32> to vector<16x32xf32>
    %54 = vector.extract_strided_slice %51 {offsets = [0, 64], sizes = [16, 32], strides = [1, 1]} : vector<16x96xf32> to vector<16x32xf32>
    %cst_23 = arith.constant dense<0.000000e+00> : vector<16x16xf32>
    %55 = tpu.matmul %52, %53, %cst_23 {dimension_numbers = #tpu.dot_dimension_numbers<[1], [1], [0], [0], [0, 0, 1, 0], [], []>} : vector<16x32xf32>, vector<16x32xf32>, vector<16x16xf32> -> vector<16x16xf32>
    %56 = vector.broadcast %0 : f32 to vector<16x16xf32>
    %57 = arith.mulf %55, %56 : vector<16x16xf32>
    %58 = vector.broadcast %7 : vector<1x16xf32> to vector<16x16xf32>
    %59 = arith.addf %57, %58 : vector<16x16xf32>
    %cst_24 = arith.constant dense<0xFF800000> : vector<16xf32>
    %60 = vector.multi_reduction <maximumf>, %59, %cst_24 [1] : vector<16x16xf32> to vector<16xf32>
    %61 = vector.shape_cast %60 : vector<16xf32> to vector<16x1xf32>
    %62 = vector.broadcast %61 : vector<16x1xf32> to vector<16x16xf32>
    %63 = arith.subf %59, %62 : vector<16x16xf32>
    %64 = math.exp %63 : vector<16x16xf32>
    %cst_25 = arith.constant dense<0.000000e+00> : vector<16xf32>
    %65 = vector.multi_reduction <add>, %64, %cst_25 [1] : vector<16x16xf32> to vector<16xf32>
    %66 = vector.shape_cast %65 : vector<16xf32> to vector<16x1xf32>
    %67 = tpu.reciprocal %66 {approx = true} : vector<16x1xf32> -> vector<16x1xf32>
    %68 = vector.broadcast %67 : vector<16x1xf32> to vector<16x16xf32>
    %69 = arith.mulf %64, %68 : vector<16x16xf32>
    %cst_26 = arith.constant dense<0.000000e+00> : vector<16x32xf32>
    %70 = tpu.matmul %69, %54, %cst_26 {dimension_numbers = #tpu.dot_dimension_numbers<[1], [0], [0], [1], [0, 0, 1, 1], [], []>} : vector<16x16xf32>, vector<16x32xf32>, vector<16x32xf32> -> vector<16x32xf32>
    %71 = vector.extract_strided_slice %45 {offsets = [0, 96], sizes = [32, 32], strides = [1, 1]} : vector<32x128xf32> to vector<32x32xf32>
    %cst_27 = arith.constant dense<0.000000e+00> : vector<16x32xf32>
    %72 = tpu.matmul %70, %71, %cst_27 {dimension_numbers = #tpu.dot_dimension_numbers<[1], [0], [0], [1], [0, 0, 1, 1], [], []>} : vector<16x32xf32>, vector<32x32xf32>, vector<16x32xf32> -> vector<16x32xf32>
    %73 = vector.extract_strided_slice %46 {offsets = [0, 96], sizes = [1, 32], strides = [1, 1]} : vector<1x128xf32> to vector<1x32xf32>
    %74 = vector.broadcast %73 : vector<1x32xf32> to vector<16x32xf32>
    %75 = arith.addf %72, %74 : vector<16x32xf32>
    %76 = arith.addf %44, %75 : vector<16x32xf32>
    %77 = vector.extract_strided_slice %18 {offsets = [2, 0], sizes = [1, 32], strides = [1, 1]} : vector<8x32xf32> to vector<1x32xf32>
    %78 = vector.extract_strided_slice %18 {offsets = [3, 0], sizes = [1, 32], strides = [1, 1]} : vector<8x32xf32> to vector<1x32xf32>
    %cst_28 = arith.constant dense<0.000000e+00> : vector<16xf32>
    %79 = vector.multi_reduction <add>, %76, %cst_28 [1] : vector<16x32xf32> to vector<16xf32>
    %80 = vector.shape_cast %79 : vector<16xf32> to vector<16x1xf32>
    %cst_29 = arith.constant 3.200000e+01 : f32
    %81 = vector.broadcast %cst_29 : f32 to vector<16x1xf32>
    %82 = arith.divf %80, %81 : vector<16x1xf32>
    %83 = vector.broadcast %82 : vector<16x1xf32> to vector<16x32xf32>
    %84 = arith.subf %76, %83 : vector<16x32xf32>
    %85 = arith.mulf %84, %84 : vector<16x32xf32>
    %cst_30 = arith.constant dense<0.000000e+00> : vector<16xf32>
    %86 = vector.multi_reduction <add>, %85, %cst_30 [1] : vector<16x32xf32> to vector<16xf32>
    %87 = vector.shape_cast %86 : vector<16xf32> to vector<16x1xf32>
    %cst_31 = arith.constant 3.200000e+01 : f32
    %88 = vector.broadcast %cst_31 : f32 to vector<16x1xf32>
    %89 = arith.divf %87, %88 : vector<16x1xf32>
    %90 = vector.broadcast %82 : vector<16x1xf32> to vector<16x32xf32>
    %91 = arith.subf %76, %90 : vector<16x32xf32>
    %cst_32 = arith.constant 9.99999996E-13 : f32
    %92 = vector.broadcast %cst_32 : f32 to vector<16x1xf32>
    %93 = arith.addf %89, %92 : vector<16x1xf32>
    %94 = math.rsqrt %93 : vector<16x1xf32>
    %95 = vector.broadcast %94 : vector<16x1xf32> to vector<16x32xf32>
    %96 = arith.mulf %91, %95 : vector<16x32xf32>
    %97 = vector.broadcast %77 : vector<1x32xf32> to vector<16x32xf32>
    %98 = arith.mulf %96, %97 : vector<16x32xf32>
    %99 = vector.broadcast %78 : vector<1x32xf32> to vector<16x32xf32>
    %100 = arith.addf %98, %99 : vector<16x32xf32>
    %c0_33 = arith.constant 0 : index
    %c0_34 = arith.constant 0 : index
    %101 = vector.load %arg10[%c0_33, %c0_34] : memref<1x96xf32, #tpu.memory_space<vmem>>, vector<1x96xf32>
    %c0_35 = arith.constant 0 : index
    %c0_36 = arith.constant 0 : index
    %102 = vector.load %arg8[%c0_35, %c0_36] : memref<32x64xf32, #tpu.memory_space<vmem>>, vector<32x64xf32>
    %cst_37 = arith.constant dense<0.000000e+00> : vector<16x64xf32>
    %103 = tpu.matmul %100, %102, %cst_37 {dimension_numbers = #tpu.dot_dimension_numbers<[1], [0], [0], [1], [0, 0, 1, 1], [], []>} : vector<16x32xf32>, vector<32x64xf32>, vector<16x64xf32> -> vector<16x64xf32>
    %104 = vector.extract_strided_slice %101 {offsets = [0, 0], sizes = [1, 64], strides = [1, 1]} : vector<1x96xf32> to vector<1x64xf32>
    %105 = vector.broadcast %104 : vector<1x64xf32> to vector<16x64xf32>
    %106 = arith.addf %103, %105 : vector<16x64xf32>
    %107 = arith.mulf %106, %106 : vector<16x64xf32>
    %108 = arith.mulf %106, %107 : vector<16x64xf32>
    %cst_38 = arith.constant 4.471500e-02 : f32
    %109 = vector.broadcast %cst_38 : f32 to vector<16x64xf32>
    %110 = arith.mulf %109, %108 : vector<16x64xf32>
    %111 = arith.addf %106, %110 : vector<16x64xf32>
    %cst_39 = arith.constant 0.797884583 : f32
    %112 = vector.broadcast %cst_39 : f32 to vector<16x64xf32>
    %113 = arith.mulf %112, %111 : vector<16x64xf32>
    %114 = math.tanh %113 : vector<16x64xf32>
    %cst_40 = arith.constant 1.000000e+00 : f32
    %115 = vector.broadcast %cst_40 : f32 to vector<16x64xf32>
    %116 = arith.addf %115, %114 : vector<16x64xf32>
    %cst_41 = arith.constant 5.000000e-01 : f32
    %117 = vector.broadcast %cst_41 : f32 to vector<16x64xf32>
    %118 = arith.mulf %117, %116 : vector<16x64xf32>
    %119 = arith.mulf %106, %118 : vector<16x64xf32>
    %c0_42 = arith.constant 0 : index
    %c0_43 = arith.constant 0 : index
    %120 = vector.load %arg9[%c0_42, %c0_43] : memref<64x32xf32, #tpu.memory_space<vmem>>, vector<64x32xf32>
    %cst_44 = arith.constant dense<0.000000e+00> : vector<16x32xf32>
    %121 = tpu.matmul %119, %120, %cst_44 {dimension_numbers = #tpu.dot_dimension_numbers<[1], [0], [0], [1], [0, 0, 1, 1], [], []>} : vector<16x64xf32>, vector<64x32xf32>, vector<16x32xf32> -> vector<16x32xf32>
    %122 = vector.extract_strided_slice %101 {offsets = [0, 64], sizes = [1, 32], strides = [1, 1]} : vector<1x96xf32> to vector<1x32xf32>
    %123 = vector.broadcast %122 : vector<1x32xf32> to vector<16x32xf32>
    %124 = arith.addf %121, %123 : vector<16x32xf32>
    %125 = arith.addf %100, %124 : vector<16x32xf32>
    %126 = vector.extract_strided_slice %18 {offsets = [4, 0], sizes = [1, 32], strides = [1, 1]} : vector<8x32xf32> to vector<1x32xf32>
    %127 = vector.extract_strided_slice %18 {offsets = [5, 0], sizes = [1, 32], strides = [1, 1]} : vector<8x32xf32> to vector<1x32xf32>
    %cst_45 = arith.constant dense<0.000000e+00> : vector<16xf32>
    %128 = vector.multi_reduction <add>, %125, %cst_45 [1] : vector<16x32xf32> to vector<16xf32>
    %129 = vector.shape_cast %128 : vector<16xf32> to vector<16x1xf32>
    %cst_46 = arith.constant 3.200000e+01 : f32
    %130 = vector.broadcast %cst_46 : f32 to vector<16x1xf32>
    %131 = arith.divf %129, %130 : vector<16x1xf32>
    %132 = vector.broadcast %131 : vector<16x1xf32> to vector<16x32xf32>
    %133 = arith.subf %125, %132 : vector<16x32xf32>
    %134 = arith.mulf %133, %133 : vector<16x32xf32>
    %cst_47 = arith.constant dense<0.000000e+00> : vector<16xf32>
    %135 = vector.multi_reduction <add>, %134, %cst_47 [1] : vector<16x32xf32> to vector<16xf32>
    %136 = vector.shape_cast %135 : vector<16xf32> to vector<16x1xf32>
    %cst_48 = arith.constant 3.200000e+01 : f32
    %137 = vector.broadcast %cst_48 : f32 to vector<16x1xf32>
    %138 = arith.divf %136, %137 : vector<16x1xf32>
    %139 = vector.broadcast %131 : vector<16x1xf32> to vector<16x32xf32>
    %140 = arith.subf %125, %139 : vector<16x32xf32>
    %cst_49 = arith.constant 9.99999996E-13 : f32
    %141 = vector.broadcast %cst_49 : f32 to vector<16x1xf32>
    %142 = arith.addf %138, %141 : vector<16x1xf32>
    %143 = math.rsqrt %142 : vector<16x1xf32>
    %144 = vector.broadcast %143 : vector<16x1xf32> to vector<16x32xf32>
    %145 = arith.mulf %140, %144 : vector<16x32xf32>
    %146 = vector.broadcast %126 : vector<1x32xf32> to vector<16x32xf32>
    %147 = arith.mulf %145, %146 : vector<16x32xf32>
    %148 = vector.broadcast %127 : vector<1x32xf32> to vector<16x32xf32>
    %149 = arith.addf %147, %148 : vector<16x32xf32>
    %150 = tpu.iota {dimensions = array<i32: 1>} : vector<4x16xi32>
    %151 = tpu.iota {dimensions = array<i32: 0>} : vector<4x16xi32>
    %cst_50 = arith.constant 0.000000e+00 : f32
    %152 = vector.broadcast %cst_50 : f32 to vector<4x16xf32>
    %c0_i32 = arith.constant 0 : i32
    %153 = vector.broadcast %c0_i32 : i32 to vector<4x16xi32>
    %154 = arith.cmpi eq, %151, %153 : vector<4x16xi32>
    %155 = arith.index_cast %arg0 : i32 to index
    %c0_51 = arith.constant 0 : index
    %156 = memref.load %arg1[%155, %c0_51] : memref<2x4xi32, #tpu.memory_space<smem>>
    %157 = vector.broadcast %156 : i32 to vector<4x16xi32>
    %158 = arith.cmpi eq, %150, %157 : vector<4x16xi32>
    %159 = arith.andi %154, %158 : vector<4x16xi1>
    %cst_52 = arith.constant 1.000000e+00 : f32
    %cst_53 = arith.constant 0.000000e+00 : f32
    %160 = vector.broadcast %cst_52 : f32 to vector<4x16xf32>
    %161 = vector.broadcast %cst_53 : f32 to vector<4x16xf32>
    %162 = arith.select %159, %160, %161 : vector<4x16xi1>, vector<4x16xf32>
    %163 = arith.addf %152, %162 : vector<4x16xf32>
    %c1_i32 = arith.constant 1 : i32
    %164 = vector.broadcast %c1_i32 : i32 to vector<4x16xi32>
    %165 = arith.cmpi eq, %151, %164 : vector<4x16xi32>
    %166 = arith.index_cast %arg0 : i32 to index
    %c1 = arith.constant 1 : index
    %167 = memref.load %arg1[%166, %c1] : memref<2x4xi32, #tpu.memory_space<smem>>
    %168 = vector.broadcast %167 : i32 to vector<4x16xi32>
    %169 = arith.cmpi eq, %150, %168 : vector<4x16xi32>
    %170 = arith.andi %165, %169 : vector<4x16xi1>
    %cst_54 = arith.constant 1.000000e+00 : f32
    %cst_55 = arith.constant 0.000000e+00 : f32
    %171 = vector.broadcast %cst_54 : f32 to vector<4x16xf32>
    %172 = vector.broadcast %cst_55 : f32 to vector<4x16xf32>
    %173 = arith.select %170, %171, %172 : vector<4x16xi1>, vector<4x16xf32>
    %174 = arith.addf %163, %173 : vector<4x16xf32>
    %c2_i32 = arith.constant 2 : i32
    %175 = vector.broadcast %c2_i32 : i32 to vector<4x16xi32>
    %176 = arith.cmpi eq, %151, %175 : vector<4x16xi32>
    %177 = arith.index_cast %arg0 : i32 to index
    %c2 = arith.constant 2 : index
    %178 = memref.load %arg1[%177, %c2] : memref<2x4xi32, #tpu.memory_space<smem>>
    %179 = vector.broadcast %178 : i32 to vector<4x16xi32>
    %180 = arith.cmpi eq, %150, %179 : vector<4x16xi32>
    %181 = arith.andi %176, %180 : vector<4x16xi1>
    %cst_56 = arith.constant 1.000000e+00 : f32
    %cst_57 = arith.constant 0.000000e+00 : f32
    %182 = vector.broadcast %cst_56 : f32 to vector<4x16xf32>
    %183 = vector.broadcast %cst_57 : f32 to vector<4x16xf32>
    %184 = arith.select %181, %182, %183 : vector<4x16xi1>, vector<4x16xf32>
    %185 = arith.addf %174, %184 : vector<4x16xf32>
    %c3_i32 = arith.constant 3 : i32
    %186 = vector.broadcast %c3_i32 : i32 to vector<4x16xi32>
    %187 = arith.cmpi eq, %151, %186 : vector<4x16xi32>
    %188 = arith.index_cast %arg0 : i32 to index
    %c3 = arith.constant 3 : index
    %189 = memref.load %arg1[%188, %c3] : memref<2x4xi32, #tpu.memory_space<smem>>
    %190 = vector.broadcast %189 : i32 to vector<4x16xi32>
    %191 = arith.cmpi eq, %150, %190 : vector<4x16xi32>
    %192 = arith.andi %187, %191 : vector<4x16xi1>
    %cst_58 = arith.constant 1.000000e+00 : f32
    %cst_59 = arith.constant 0.000000e+00 : f32
    %193 = vector.broadcast %cst_58 : f32 to vector<4x16xf32>
    %194 = vector.broadcast %cst_59 : f32 to vector<4x16xf32>
    %195 = arith.select %192, %193, %194 : vector<4x16xi1>, vector<4x16xf32>
    %196 = arith.addf %185, %195 : vector<4x16xf32>
    %cst_60 = arith.constant dense<0.000000e+00> : vector<4x32xf32>
    %197 = tpu.matmul %196, %149, %cst_60 {dimension_numbers = #tpu.dot_dimension_numbers<[1], [0], [0], [1], [0, 0, 1, 1], [], []>} : vector<4x16xf32>, vector<16x32xf32>, vector<4x32xf32> -> vector<4x32xf32>
    %c0_61 = arith.constant 0 : index
    %c0_62 = arith.constant 0 : index
    %198 = vector.load %arg11[%c0_61, %c0_62] : memref<32x128xf32, #tpu.memory_space<vmem>>, vector<32x128xf32>
    %199 = vector.extract_strided_slice %198 {offsets = [0, 0], sizes = [32, 32], strides = [1, 1]} : vector<32x128xf32> to vector<32x32xf32>
    %cst_63 = arith.constant dense<0.000000e+00> : vector<4x32xf32>
    %200 = tpu.matmul %197, %199, %cst_63 {dimension_numbers = #tpu.dot_dimension_numbers<[1], [0], [0], [1], [0, 0, 1, 1], [], []>} : vector<4x32xf32>, vector<32x32xf32>, vector<4x32xf32> -> vector<4x32xf32>
    %201 = vector.extract_strided_slice %198 {offsets = [0, 32], sizes = [32, 64], strides = [1, 1]} : vector<32x128xf32> to vector<32x64xf32>
    %cst_64 = arith.constant dense<0.000000e+00> : vector<16x64xf32>
    %202 = tpu.matmul %149, %201, %cst_64 {dimension_numbers = #tpu.dot_dimension_numbers<[1], [0], [0], [1], [0, 0, 1, 1], [], []>} : vector<16x32xf32>, vector<32x64xf32>, vector<16x64xf32> -> vector<16x64xf32>
    %203 = vector.extract_strided_slice %202 {offsets = [0, 0], sizes = [16, 32], strides = [1, 1]} : vector<16x64xf32> to vector<16x32xf32>
    %cst_65 = arith.constant dense<0.000000e+00> : vector<4x16xf32>
    %204 = tpu.matmul %200, %203, %cst_65 {dimension_numbers = #tpu.dot_dimension_numbers<[1], [1], [0], [0], [0, 0, 1, 0], [], []>} : vector<4x32xf32>, vector<16x32xf32>, vector<4x16xf32> -> vector<4x16xf32>
    %205 = vector.broadcast %0 : f32 to vector<4x16xf32>
    %206 = arith.mulf %204, %205 : vector<4x16xf32>
    %207 = vector.broadcast %12 : vector<1x16xf32> to vector<4x16xf32>
    %208 = arith.addf %206, %207 : vector<4x16xf32>
    %cst_66 = arith.constant dense<0xFF800000> : vector<4xf32>
    %209 = vector.multi_reduction <maximumf>, %208, %cst_66 [1] : vector<4x16xf32> to vector<4xf32>
    %210 = vector.shape_cast %209 : vector<4xf32> to vector<4x1xf32>
    %211 = vector.broadcast %210 : vector<4x1xf32> to vector<4x16xf32>
    %212 = arith.subf %208, %211 : vector<4x16xf32>
    %213 = math.exp %212 : vector<4x16xf32>
    %cst_67 = arith.constant dense<0.000000e+00> : vector<4xf32>
    %214 = vector.multi_reduction <add>, %213, %cst_67 [1] : vector<4x16xf32> to vector<4xf32>
    %215 = vector.shape_cast %214 : vector<4xf32> to vector<4x1xf32>
    %216 = tpu.reciprocal %215 {approx = true} : vector<4x1xf32> -> vector<4x1xf32>
    %217 = vector.broadcast %216 : vector<4x1xf32> to vector<4x16xf32>
    %218 = arith.mulf %213, %217 : vector<4x16xf32>
    %219 = vector.extract_strided_slice %202 {offsets = [0, 32], sizes = [16, 32], strides = [1, 1]} : vector<16x64xf32> to vector<16x32xf32>
    %cst_68 = arith.constant dense<0.000000e+00> : vector<4x32xf32>
    %220 = tpu.matmul %218, %219, %cst_68 {dimension_numbers = #tpu.dot_dimension_numbers<[1], [0], [0], [1], [0, 0, 1, 1], [], []>} : vector<4x16xf32>, vector<16x32xf32>, vector<4x32xf32> -> vector<4x32xf32>
    %221 = vector.extract_strided_slice %198 {offsets = [0, 96], sizes = [32, 32], strides = [1, 1]} : vector<32x128xf32> to vector<32x32xf32>
    %cst_69 = arith.constant dense<0.000000e+00> : vector<4x32xf32>
    %222 = tpu.matmul %220, %221, %cst_69 {dimension_numbers = #tpu.dot_dimension_numbers<[1], [0], [0], [1], [0, 0, 1, 1], [], []>} : vector<4x32xf32>, vector<32x32xf32>, vector<4x32xf32> -> vector<4x32xf32>
    %223 = arith.addf %197, %222 : vector<4x32xf32>
    %224 = vector.extract_strided_slice %18 {offsets = [6, 0], sizes = [1, 32], strides = [1, 1]} : vector<8x32xf32> to vector<1x32xf32>
    %225 = vector.extract_strided_slice %18 {offsets = [7, 0], sizes = [1, 32], strides = [1, 1]} : vector<8x32xf32> to vector<1x32xf32>
    %cst_70 = arith.constant dense<0.000000e+00> : vector<4xf32>
    %226 = vector.multi_reduction <add>, %223, %cst_70 [1] : vector<4x32xf32> to vector<4xf32>
    %227 = vector.shape_cast %226 : vector<4xf32> to vector<4x1xf32>
    %cst_71 = arith.constant 3.200000e+01 : f32
    %228 = vector.broadcast %cst_71 : f32 to vector<4x1xf32>
    %229 = arith.divf %227, %228 : vector<4x1xf32>
    %230 = vector.broadcast %229 : vector<4x1xf32> to vector<4x32xf32>
    %231 = arith.subf %223, %230 : vector<4x32xf32>
    %232 = arith.mulf %231, %231 : vector<4x32xf32>
    %cst_72 = arith.constant dense<0.000000e+00> : vector<4xf32>
    %233 = vector.multi_reduction <add>, %232, %cst_72 [1] : vector<4x32xf32> to vector<4xf32>
    %234 = vector.shape_cast %233 : vector<4xf32> to vector<4x1xf32>
    %cst_73 = arith.constant 3.200000e+01 : f32
    %235 = vector.broadcast %cst_73 : f32 to vector<4x1xf32>
    %236 = arith.divf %234, %235 : vector<4x1xf32>
    %237 = vector.broadcast %229 : vector<4x1xf32> to vector<4x32xf32>
    %238 = arith.subf %223, %237 : vector<4x32xf32>
    %cst_74 = arith.constant 9.99999996E-13 : f32
    %239 = vector.broadcast %cst_74 : f32 to vector<4x1xf32>
    %240 = arith.addf %236, %239 : vector<4x1xf32>
    %241 = math.rsqrt %240 : vector<4x1xf32>
    %242 = vector.broadcast %241 : vector<4x1xf32> to vector<4x32xf32>
    %243 = arith.mulf %238, %242 : vector<4x32xf32>
    %244 = vector.broadcast %224 : vector<1x32xf32> to vector<4x32xf32>
    %245 = arith.mulf %243, %244 : vector<4x32xf32>
    %246 = vector.broadcast %225 : vector<1x32xf32> to vector<4x32xf32>
    %247 = arith.addf %245, %246 : vector<4x32xf32>
    %c0_75 = arith.constant 0 : index
    %c0_76 = arith.constant 0 : index
    %248 = vector.load %arg13[%c0_75, %c0_76] : memref<32x10xf32, #tpu.memory_space<vmem>>, vector<32x10xf32>
    %cst_77 = arith.constant dense<0.000000e+00> : vector<4x10xf32>
    %249 = tpu.matmul %247, %248, %cst_77 {dimension_numbers = #tpu.dot_dimension_numbers<[1], [0], [0], [1], [0, 0, 1, 1], [], []>} : vector<4x32xf32>, vector<32x10xf32>, vector<4x10xf32> -> vector<4x10xf32>
    %c0_78 = arith.constant 0 : index
    %c0_79 = arith.constant 0 : index
    %250 = vector.load %arg14[%c0_78, %c0_79] : memref<1x10xf32, #tpu.memory_space<vmem>>, vector<1x10xf32>
    %251 = vector.broadcast %250 : vector<1x10xf32> to vector<4x10xf32>
    %252 = arith.addf %249, %251 : vector<4x10xf32>
    %253 = vector.extract_strided_slice %252 {offsets = [0, 0], sizes = [4, 2], strides = [1, 1]} : vector<4x10xf32> to vector<4x2xf32>
    %cst_80 = arith.constant dense<0xFF800000> : vector<4xf32>
    %254 = vector.multi_reduction <maximumf>, %253, %cst_80 [1] : vector<4x2xf32> to vector<4xf32>
    %255 = vector.shape_cast %254 : vector<4xf32> to vector<4x1xf32>
    %256 = vector.broadcast %255 : vector<4x1xf32> to vector<4x2xf32>
    %257 = arith.subf %253, %256 : vector<4x2xf32>
    %258 = math.exp %257 : vector<4x2xf32>
    %cst_81 = arith.constant dense<0.000000e+00> : vector<4xf32>
    %259 = vector.multi_reduction <add>, %258, %cst_81 [1] : vector<4x2xf32> to vector<4xf32>
    %260 = vector.shape_cast %259 : vector<4xf32> to vector<4x1xf32>
    %261 = tpu.reciprocal %260 {approx = true} : vector<4x1xf32> -> vector<4x1xf32>
    %262 = vector.broadcast %261 : vector<4x1xf32> to vector<4x2xf32>
    %263 = arith.mulf %258, %262 : vector<4x2xf32>
    %c0_82 = arith.constant 0 : index
    %c0_83 = arith.constant 0 : index
    %264 = vector.load %arg4[%c0_82, %c0_83] : memref<4x7xf32, #tpu.memory_space<vmem>>, vector<4x7xf32>
    %265 = vector.extract_strided_slice %252 {offsets = [0, 2], sizes = [4, 6], strides = [1, 1]} : vector<4x10xf32> to vector<4x6xf32>
    %266 = vector.extract_strided_slice %264 {offsets = [0, 0], sizes = [4, 6], strides = [1, 1]} : vector<4x7xf32> to vector<4x6xf32>
    %cst_84 = arith.constant 1.000000e+00 : f32
    %267 = vector.broadcast %cst_84 : f32 to vector<4x6xf32>
    %268 = arith.subf %266, %267 : vector<4x6xf32>
    %cst_85 = arith.constant 1.000000e+09 : f32
    %269 = vector.broadcast %cst_85 : f32 to vector<4x6xf32>
    %270 = arith.mulf %268, %269 : vector<4x6xf32>
    %271 = arith.addf %265, %270 : vector<4x6xf32>
    %cst_86 = arith.constant dense<0xFF800000> : vector<4xf32>
    %272 = vector.multi_reduction <maximumf>, %271, %cst_86 [1] : vector<4x6xf32> to vector<4xf32>
    %273 = vector.shape_cast %272 : vector<4xf32> to vector<4x1xf32>
    %274 = vector.broadcast %273 : vector<4x1xf32> to vector<4x6xf32>
    %275 = arith.subf %271, %274 : vector<4x6xf32>
    %276 = math.exp %275 : vector<4x6xf32>
    %cst_87 = arith.constant dense<0.000000e+00> : vector<4xf32>
    %277 = vector.multi_reduction <add>, %276, %cst_87 [1] : vector<4x6xf32> to vector<4xf32>
    %278 = vector.shape_cast %277 : vector<4xf32> to vector<4x1xf32>
    %279 = tpu.reciprocal %278 {approx = true} : vector<4x1xf32> -> vector<4x1xf32>
    %280 = vector.broadcast %279 : vector<4x1xf32> to vector<4x6xf32>
    %281 = arith.mulf %276, %280 : vector<4x6xf32>
    %282 = vector.extract_strided_slice %252 {offsets = [0, 8], sizes = [4, 1], strides = [1, 1]} : vector<4x10xf32> to vector<4x1xf32>
    %283 = arith.negf %282 : vector<4x1xf32>
    %284 = math.exp %283 : vector<4x1xf32>
    %cst_88 = arith.constant 1.000000e+00 : f32
    %285 = vector.broadcast %cst_88 : f32 to vector<4x1xf32>
    %286 = arith.addf %285, %284 : vector<4x1xf32>
    %287 = arith.divf %285, %286 : vector<4x1xf32>
    %288 = vector.extract_strided_slice %264 {offsets = [0, 6], sizes = [4, 1], strides = [1, 1]} : vector<4x7xf32> to vector<4x1xf32>
    %289 = vector.extract_strided_slice %252 {offsets = [0, 9], sizes = [4, 1], strides = [1, 1]} : vector<4x10xf32> to vector<4x1xf32>
    %290 = arith.negf %289 : vector<4x1xf32>
    %291 = math.exp %290 : vector<4x1xf32>
    %cst_89 = arith.constant 1.000000e+00 : f32
    %292 = vector.broadcast %cst_89 : f32 to vector<4x1xf32>
    %293 = arith.addf %292, %291 : vector<4x1xf32>
    %294 = arith.divf %292, %293 : vector<4x1xf32>
    %295 = arith.mulf %294, %288 : vector<4x1xf32>
    %cst_90 = arith.constant 1.000000e+00 : f32
    %296 = vector.broadcast %cst_90 : f32 to vector<4x1xf32>
    %297 = arith.subf %296, %288 : vector<4x1xf32>
    %298 = arith.addf %295, %297 : vector<4x1xf32>
    %299 = arith.addf %197, %247 : vector<4x32xf32>
    %c0_91 = arith.constant 0 : index
    %c0_92 = arith.constant 0 : index
    %300 = vector.load %arg12[%c0_91, %c0_92] : memref<32x64xf32, #tpu.memory_space<vmem>>, vector<32x64xf32>
    %cst_93 = arith.constant dense<0.000000e+00> : vector<4x64xf32>
    %301 = tpu.matmul %299, %300, %cst_93 {dimension_numbers = #tpu.dot_dimension_numbers<[1], [0], [0], [1], [0, 0, 1, 1], [], []>} : vector<4x32xf32>, vector<32x64xf32>, vector<4x64xf32> -> vector<4x64xf32>
    %302 = vector.extract_strided_slice %301 {offsets = [0, 0], sizes = [4, 32], strides = [1, 1]} : vector<4x64xf32> to vector<4x32xf32>
    %cst_94 = arith.constant dense<0.000000e+00> : vector<4x16xf32>
    %303 = tpu.matmul %302, %149, %cst_94 {dimension_numbers = #tpu.dot_dimension_numbers<[1], [1], [0], [0], [0, 0, 1, 0], [], []>} : vector<4x32xf32>, vector<16x32xf32>, vector<4x16xf32> -> vector<4x16xf32>
    %304 = vector.broadcast %0 : f32 to vector<4x16xf32>
    %305 = arith.mulf %303, %304 : vector<4x16xf32>
    %306 = vector.broadcast %17 : vector<1x16xf32> to vector<4x16xf32>
    %307 = arith.addf %305, %306 : vector<4x16xf32>
    %cst_95 = arith.constant dense<0xFF800000> : vector<4xf32>
    %308 = vector.multi_reduction <maximumf>, %307, %cst_95 [1] : vector<4x16xf32> to vector<4xf32>
    %309 = vector.shape_cast %308 : vector<4xf32> to vector<4x1xf32>
    %310 = vector.broadcast %309 : vector<4x1xf32> to vector<4x16xf32>
    %311 = arith.subf %307, %310 : vector<4x16xf32>
    %312 = math.exp %311 : vector<4x16xf32>
    %cst_96 = arith.constant dense<0.000000e+00> : vector<4xf32>
    %313 = vector.multi_reduction <add>, %312, %cst_96 [1] : vector<4x16xf32> to vector<4xf32>
    %314 = vector.shape_cast %313 : vector<4xf32> to vector<4x1xf32>
    %315 = tpu.reciprocal %314 {approx = true} : vector<4x1xf32> -> vector<4x1xf32>
    %316 = vector.broadcast %315 : vector<4x1xf32> to vector<4x16xf32>
    %317 = arith.mulf %312, %316 : vector<4x16xf32>
    %318 = vector.extract_strided_slice %301 {offsets = [0, 32], sizes = [4, 32], strides = [1, 1]} : vector<4x64xf32> to vector<4x32xf32>
    %cst_97 = arith.constant dense<0.000000e+00> : vector<4x16xf32>
    %319 = tpu.matmul %318, %149, %cst_97 {dimension_numbers = #tpu.dot_dimension_numbers<[1], [1], [0], [0], [0, 0, 1, 0], [], []>} : vector<4x32xf32>, vector<16x32xf32>, vector<4x16xf32> -> vector<4x16xf32>
    %320 = vector.broadcast %0 : f32 to vector<4x16xf32>
    %321 = arith.mulf %319, %320 : vector<4x16xf32>
    %322 = vector.broadcast %17 : vector<1x16xf32> to vector<4x16xf32>
    %323 = arith.addf %321, %322 : vector<4x16xf32>
    %cst_98 = arith.constant dense<0xFF800000> : vector<4xf32>
    %324 = vector.multi_reduction <maximumf>, %323, %cst_98 [1] : vector<4x16xf32> to vector<4xf32>
    %325 = vector.shape_cast %324 : vector<4xf32> to vector<4x1xf32>
    %326 = vector.broadcast %325 : vector<4x1xf32> to vector<4x16xf32>
    %327 = arith.subf %323, %326 : vector<4x16xf32>
    %328 = math.exp %327 : vector<4x16xf32>
    %cst_99 = arith.constant dense<0.000000e+00> : vector<4xf32>
    %329 = vector.multi_reduction <add>, %328, %cst_99 [1] : vector<4x16xf32> to vector<4xf32>
    %330 = vector.shape_cast %329 : vector<4xf32> to vector<4x1xf32>
    %331 = tpu.reciprocal %330 {approx = true} : vector<4x1xf32> -> vector<4x1xf32>
    %332 = vector.broadcast %331 : vector<4x1xf32> to vector<4x16xf32>
    %333 = arith.mulf %328, %332 : vector<4x16xf32>
    %c0_100 = arith.constant 0 : index
    %c0_101 = arith.constant 0 : index
    %c0_102 = arith.constant 0 : index
    %334 = vector.load %arg15[%c0_100, %c0_101, %c0_102] : memref<1x4x42xf32, #tpu.memory_space<vmem>>, vector<1x4x2xf32>
    %335 = vector.shape_cast %334 : vector<1x4x2xf32> to vector<4x2xf32>
    %336 = vector.shape_cast %263 : vector<4x2xf32> to vector<1x4x2xf32>
    tpu.vector_store %arg15[%c0_100, %c0_101, %c0_102], %336 {strides = array<i32>} : memref<1x4x42xf32, #tpu.memory_space<vmem>>, vector<1x4x2xf32>,
    %c0_103 = arith.constant 0 : index
    %c0_104 = arith.constant 0 : index
    %c2_105 = arith.constant 2 : index
    %337 = vector.load %arg15[%c0_103, %c0_104, %c2_105] : memref<1x4x42xf32, #tpu.memory_space<vmem>>, vector<1x4x16xf32>
    %338 = vector.shape_cast %337 : vector<1x4x16xf32> to vector<4x16xf32>
    %339 = vector.shape_cast %317 : vector<4x16xf32> to vector<1x4x16xf32>
    tpu.vector_store %arg15[%c0_103, %c0_104, %c2_105], %339 {strides = array<i32>} : memref<1x4x42xf32, #tpu.memory_space<vmem>>, vector<1x4x16xf32>,
    %c0_106 = arith.constant 0 : index
    %c0_107 = arith.constant 0 : index
    %c18 = arith.constant 18 : index
    %340 = vector.load %arg15[%c0_106, %c0_107, %c18] : memref<1x4x42xf32, #tpu.memory_space<vmem>>, vector<1x4x16xf32>
    %341 = vector.shape_cast %340 : vector<1x4x16xf32> to vector<4x16xf32>
    %342 = vector.shape_cast %333 : vector<4x16xf32> to vector<1x4x16xf32>
    tpu.vector_store %arg15[%c0_106, %c0_107, %c18], %342 {strides = array<i32>} : memref<1x4x42xf32, #tpu.memory_space<vmem>>, vector<1x4x16xf32>,
    %c0_108 = arith.constant 0 : index
    %c0_109 = arith.constant 0 : index
    %c34 = arith.constant 34 : index
    %343 = vector.load %arg15[%c0_108, %c0_109, %c34] : memref<1x4x42xf32, #tpu.memory_space<vmem>>, vector<1x4x6xf32>
    %344 = vector.shape_cast %343 : vector<1x4x6xf32> to vector<4x6xf32>
    %345 = vector.shape_cast %281 : vector<4x6xf32> to vector<1x4x6xf32>
    tpu.vector_store %arg15[%c0_108, %c0_109, %c34], %345 {strides = array<i32>} : memref<1x4x42xf32, #tpu.memory_space<vmem>>, vector<1x4x6xf32>,
    %c0_110 = arith.constant 0 : index
    %c0_111 = arith.constant 0 : index
    %c40 = arith.constant 40 : index
    %346 = vector.load %arg15[%c0_110, %c0_111, %c40] : memref<1x4x42xf32, #tpu.memory_space<vmem>>, vector<1x4x1xf32>
    %347 = vector.shape_cast %346 : vector<1x4x1xf32> to vector<4x1xf32>
    %348 = vector.shape_cast %287 : vector<4x1xf32> to vector<1x4x1xf32>
    tpu.vector_store %arg15[%c0_110, %c0_111, %c40], %348 {strides = array<i32>} : memref<1x4x42xf32, #tpu.memory_space<vmem>>, vector<1x4x1xf32>,
    %c0_112 = arith.constant 0 : index
    %c0_113 = arith.constant 0 : index
    %c41 = arith.constant 41 : index
    %349 = vector.load %arg15[%c0_112, %c0_113, %c41] : memref<1x4x42xf32, #tpu.memory_space<vmem>>, vector<1x4x1xf32>
    %350 = vector.shape_cast %349 : vector<1x4x1xf32> to vector<4x1xf32>
    %351 = vector.shape_cast %298 : vector<4x1xf32> to vector<1x4x1xf32>
    tpu.vector_store %arg15[%c0_112, %c0_113, %c41], %351 {strides = array<i32>} : memref<1x4x42xf32, #tpu.memory_space<vmem>>, vector<1x4x1xf32>,
    return
  }
  func.func @transform_0(%arg0: i32, %arg1: memref<2x4xi32, #tpu.memory_space<smem>>) -> (i32, i32, i32) {
    %c0_i32 = arith.constant 0 : i32
    %c0_i32_0 = arith.constant 0 : i32
    %c0_i32_1 = arith.constant 0 : i32
    return %arg0, %c0_i32, %c0_i32_0 : i32, i32, i32
  }
  func.func @transform_1(%arg0: i32, %arg1: memref<2x4xi32, #tpu.memory_space<smem>>) -> (i32, i32, i32) {
    %c0_i32 = arith.constant 0 : i32
    %c0_i32_0 = arith.constant 0 : i32
    %c0_i32_1 = arith.constant 0 : i32
    return %arg0, %c0_i32, %c0_i32_0 : i32, i32, i32
  }
  func.func @transform_2(%arg0: i32, %arg1: memref<2x4xi32, #tpu.memory_space<smem>>) -> (i32, i32) {
    %c0_i32 = arith.constant 0 : i32
    %c0_i32_0 = arith.constant 0 : i32
    %c0_i32_1 = arith.constant 0 : i32
    return %c0_i32, %c0_i32_0 : i32, i32
  }
  func.func @transform_3(%arg0: i32, %arg1: memref<2x4xi32, #tpu.memory_space<smem>>) -> (i32, i32) {
    %c0_i32 = arith.constant 0 : i32
    %c0_i32_0 = arith.constant 0 : i32
    %c0_i32_1 = arith.constant 0 : i32
    return %c0_i32, %c0_i32_0 : i32, i32
  }
  func.func @transform_4(%arg0: i32, %arg1: memref<2x4xi32, #tpu.memory_space<smem>>) -> (i32, i32) {
    %c0_i32 = arith.constant 0 : i32
    %c0_i32_0 = arith.constant 0 : i32
    %c0_i32_1 = arith.constant 0 : i32
    return %c0_i32, %c0_i32_0 : i32, i32
  }
  func.func @transform_5(%arg0: i32, %arg1: memref<2x4xi32, #tpu.memory_space<smem>>) -> (i32, i32) {
    %c0_i32 = arith.constant 0 : i32
    %c0_i32_0 = arith.constant 0 : i32
    %c0_i32_1 = arith.constant 0 : i32
    return %c0_i32, %c0_i32_0 : i32, i32
  }
  func.func @transform_6(%arg0: i32, %arg1: memref<2x4xi32, #tpu.memory_space<smem>>) -> (i32, i32) {
    %c0_i32 = arith.constant 0 : i32
    %c0_i32_0 = arith.constant 0 : i32
    %c0_i32_1 = arith.constant 0 : i32
    return %c0_i32, %c0_i32_0 : i32, i32
  }
  func.func @transform_7(%arg0: i32, %arg1: memref<2x4xi32, #tpu.memory_space<smem>>) -> (i32, i32) {
    %c0_i32 = arith.constant 0 : i32
    %c0_i32_0 = arith.constant 0 : i32
    %c0_i32_1 = arith.constant 0 : i32
    return %c0_i32, %c0_i32_0 : i32, i32
  }
  func.func @transform_8(%arg0: i32, %arg1: memref<2x4xi32, #tpu.memory_space<smem>>) -> (i32, i32) {
    %c0_i32 = arith.constant 0 : i32
    %c0_i32_0 = arith.constant 0 : i32
    %c0_i32_1 = arith.constant 0 : i32
    return %c0_i32, %c0_i32_0 : i32, i32
  }
  func.func @transform_9(%arg0: i32, %arg1: memref<2x4xi32, #tpu.memory_space<smem>>) -> (i32, i32) {
    %c0_i32 = arith.constant 0 : i32
    %c0_i32_0 = arith.constant 0 : i32
    %c0_i32_1 = arith.constant 0 : i32
    return %c0_i32, %c0_i32_0 : i32, i32
  }
  func.func @transform_10(%arg0: i32, %arg1: memref<2x4xi32, #tpu.memory_space<smem>>) -> (i32, i32) {
    %c0_i32 = arith.constant 0 : i32
    %c0_i32_0 = arith.constant 0 : i32
    %c0_i32_1 = arith.constant 0 : i32
    return %c0_i32, %c0_i32_0 : i32, i32
  }
  func.func @transform_11(%arg0: i32, %arg1: memref<2x4xi32, #tpu.memory_space<smem>>) -> (i32, i32) {
    %c0_i32 = arith.constant 0 : i32
    %c0_i32_0 = arith.constant 0 : i32
    %c0_i32_1 = arith.constant 0 : i32
    return %c0_i32, %c0_i32_0 : i32, i32
  }
  func.func @transform_12(%arg0: i32, %arg1: memref<2x4xi32, #tpu.memory_space<smem>>) -> (i32, i32) {
    %c0_i32 = arith.constant 0 : i32
    %c0_i32_0 = arith.constant 0 : i32
    %c0_i32_1 = arith.constant 0 : i32
    return %c0_i32, %c0_i32_0 : i32, i32
  }
  func.func @transform_13(%arg0: i32, %arg1: memref<2x4xi32, #tpu.memory_space<smem>>) -> (i32, i32, i32) {
    %c0_i32 = arith.constant 0 : i32
    %c0_i32_0 = arith.constant 0 : i32
    %c0_i32_1 = arith.constant 0 : i32
    return %arg0, %c0_i32, %c0_i32_0 : i32, i32, i32
  }
}

</mosaic_0001>

<bundles_post_ra>
// kernel: dss_forward.1
= control target key start
LH: loop header
LB: loop body
LE: loop exit
PB: predicated region body
PF: predicated region fallthrough
CT: control target
= control target key end

     0   :  { %s3210_s0 = inlined_call_operand.vmem [shape: s32[2,4], index: 0, kind: input, shape index: {}]   ;;  %s3211_s1 = inlined_call_operand.vmem [shape: f32[2,16,32], index: 1, kind: input, shape index: {}]   ;;  %s3212_s2 = inlined_call_operand.vmem [shape: f32[2,3,16], index: 2, kind: input, shape index: {}]   ;;  %s3213_s3 = inlined_call_operand.vmem [shape: f32[4,7], index: 3, kind: input, shape index: {}]   ;;  %s3214_s4 = inlined_call_operand.vmem [shape: f32[8,32], index: 4, kind: input, shape index: {}]   ;;  %s3215_s5 = inlined_call_operand.vmem [shape: f32[32,128], index: 5, kind: input, shape index: {}]   ;;  %s3216_s6 = inlined_call_operand.vmem [shape: f32[1,128], index: 6, kind: input, shape index: {}]   ;;  %s3217_s7 = inlined_call_operand.vmem [shape: f32[32,64], index: 7, kind: input, shape index: {}]   ;;  %s3218_s8 = inlined_call_operand.vmem [shape: f32[64,32], index: 8, kind: input, shape index: {}]   ;;  %s3219_s9 = inlined_call_operand.vmem [shape: f32[1,96], index: 9, kind: input, shape index: {}]   ;;  %s3220_s10 = inlined_call_operand.vmem [shape: f32[32,128], index: 10, kind: input, shape index: {}]   ;;  %s3221_s11 = inlined_call_operand.vmem [shape: f32[32,64], index: 11, kind: input, shape index: {}]   ;;  %s3222_s12 = inlined_call_operand.vmem [shape: f32[32,10], index: 12, kind: input, shape index: {}]   ;;  %s3223_s13 = inlined_call_operand.vmem [shape: f32[1,10], index: 13, kind: input, shape index: {}]   ;;  %s3224_s14 = inlined_call_operand.vmem [shape: f32[2,4,42], index: 14, kind: output, shape index: {}]  }
   0x1   :  { %s19_s15 = sshll.u32 %s3210_s0, 4  ;;  %s20_s15 = int_to_ptr.vmem [resolvable:$true] %s19_s15 }
   0x2   :  { %s2746_s16 = scalar_lea.vmem %s20_s15, 32  ;;  %p2751_p1 = scmp.lt.s32.totalorder %s20_s15, %s20_s15 }
   0x3   :  { %p2747_p0 = scmp.ne.s32.totalorder %s20_s15, %s2746_s16  ;;  %p2752_p2 = scmp.lt.s32.totalorder %s2746_s16, %s2746_s16 }
   0x5   :  { %p2753_p3 = por %p2752_p2, %p2751_p1 }
   0x7   :  { %p2754_p4 = pnand %p2753_p3, %p2747_p0 }
   0x9   :  { %2757 = shalt.err (!%p2754_p4)  }
   0xa   :  { %s2768_s17 = smov [#allocation3]  }
   0xb   :  { %22 = dma.vmem_to_smem %s20_s15, 32, %s2768_s17, [#allocation2] }
   0xc   :  { %2762 = dma.done.wait [#allocation2], 32 }
   0xd   :  { %2763 = vsyncadd [#allocation2], 4294967264 }
   0xe   :  { %24 = sfence }
   0xf   :  { %s2857_s18 = smov 0  }
  0x10 LB: > { %s2863_s0 = sadd.s32 4294967295, %s2766_s18   ;;  %p2253_p5 = scmp.ge.s32.totalorder %s2766_s18, 1  ;;  %s2766_s18 = sphi %s2857_s18, %s30_s18  }
  0x11   : > { %p403_p6 = scmp.lt.s32.totalorder %s2766_s18, 3 }
  0x13   : > { %p404_p7 = pnand %p2253_p5, %p403_p6 }
  0x14   : > { %p450_p8 = scmp.lt.s32.totalorder (!%p404_p7), %s2863_s0, 1  ;;  %vm469_vm0 = vcmask (!%p404_p7), 261120   ;;  %v2882_v14 = vld [vmem:[%s3215_s5] sm:$0xff] (!%p404_p7)  ;;  %v2887_v15 = vld [vmem:[%s3215_s5 + $0x8] sm:$0xff] (!%p404_p7)  ;;  %v2892_v16 = vld [vmem:[%s3215_s5 + $0x10] sm:$0xff] (!%p404_p7)  ;;  %v497_v23 = vlaneseq (!%p404_p7)  ;;  %s2769_s22 = smov (!%p404_p7), 96  }
  0x15   : > { %407 = sbr.rel (%p404_p7) target bundleno = 5454 (0x154e), region = 72  ;;  %v2661_v17 = vpack.i.bf16 (!%p404_p7), %v2887_v15, %v2882_v14  ;;  %v2532_v18 = vpack.c.bf16 (!%p404_p7), %v2887_v15, %v2882_v14  ;;  %v2901_v19 = vld [vmem:[%s3215_s5 + $0x18] sm:$0xff] (!%p404_p7)  ;;  %v2912_v30 = vld [vmem:[%s3214_s4] sm:$0xff] (!%p404_p7)  ;;  %vm2934_vm1 = vmpackc.low (!%p404_p7), %vm469_vm0, %vm469_vm0  ;;  %vm698_vm2 = vcmask (!%p404_p7), 130048   ;;  %s2770_s27 = smov (!%p404_p7), 64   ;;  %vm1069_vm3 = vcmask (!%p404_p7), 523264  }
  0x16   : > { %v2536_v20 = vpack.c.bf16 (!%p404_p7), %v2901_v19, %v2892_v16  ;;  %v2906_v27 = vshrl.u32 (!%p404_p7), %v497_v23, 7  ;;  %v2259_v42 = vld [vmem:[%s3216_s6] ss:$0 sm:$0xff] (!%p404_p7)  ;;  %s2771_s28 = smov (!%p404_p7), 32   ;;  %vm2773_vm4 = vmmov (!%p404_p7), 0   ;;  %s2275_s15 = sshll.u32 (!%p404_p7), %s2863_s0, 7 }
  0x17   : > { %2533 = vmatprep.subr.bf16.mxu0 (!%p404_p7), %v2532_v18  ;;  %s1204_s16 = sadd.s32 (!%p404_p7), 1, %s2275_s15  ;;  %s1197_s17 = sld [smem:[#allocation3 + %s2275_s15]] (!%p404_p7) }
  0x18   : > { %2535 = vmatpush3.bf16.msra.mxu0 (!%p404_p7), %v2532_v18  ;;  %v499_v29 = vsub.s32 (!%p404_p7), 0, %v2906_v27  ;;  %v505_v31 = vsub.s32 (!%p404_p7), 1, %v2906_v27  ;;  %s1212_s21 = sadd.s32 (!%p404_p7), 2, %s2275_s15  ;;  %vm1195_vm5 = vcmp.eq.s32.totalorder (!%p404_p7), %v2906_v27, 0  ;;  %vm1203_vm7 = vcmp.eq.s32.totalorder (!%p404_p7), %v2906_v27, 1 }
  0x19   : > { %2537 = vmatprep.subr.bf16.mxu0 (!%p404_p7), %v2536_v20  ;;  %s1213_s24 = sld [smem:[#allocation3 + %s1212_s21]] (!%p404_p7)  ;;  %vm1211_vm11 = vcmp.eq.s32.totalorder (!%p404_p7), %v2906_v27, 2  ;;  %vm1219_vm14 = vcmp.eq.s32.totalorder (!%p404_p7), %v2906_v27, 3 }
  0x1a   : > { %v500_v32 = vrot.slane (!%p404_p7), %v2912_v30, %v499_v29  ;;  %v506_v35 = vrot.slane (!%p404_p7), %v2912_v30, %v505_v31 }
  0x1c   : > { %s2869_s19 = scalar_select %p450_p8, %s2863_s0, 1  ;;  %2539 = vmatpush3.bf16.msra.mxu0 %v2536_v20 }
  0x1e   : > { %s2298_s20 = sshll.u32 %s2869_s19, 4 }
  0x1f   : > { %s454_s23 = scalar_lea.vmem %s3211_s1, %s2298_s20  ;;  %s1205_s20 = sld [smem:[#allocation3 + %s1204_s16]] }
  0x20   : > { %v467_v0 = vld [vmem:[%s454_s23] sm:$0xff]  ;;  %v468_v1 = vld [vmem:[%s454_s23 + $0x8] sm:$0xff]  ;;  %s2256_s23 = sshll.u32 %s2869_s19, 2 }
  0x21   : > { %v470_v2 = vsel %vm469_vm0, %v467_v0, 0.0  ;;  %v473_v3 = vsel %vm469_vm0, %v468_v1, 0.0  ;;  %s458_s26 = scalar_lea.vmem %s3212_s2, %s2256_s23 }
  0x22   : > { %471 = vadd.xlane.f32.xlu0 %v470_v2  ;;  %v463_v53 = vld [vmem:[%s458_s26] sm:$0x7]  ;;  %s462_s26 = scalar_lea.vmem %s3224_s14, %s2256_s23 }
  0x23   : > { %v2258_v54 = vadd.f32 -1.0, %v463_v53 }
  0x25   : > { %v2949_v55 = vmul.f32 1e+09, %v2258_v54 }
  0x26   : > { %474 = vadd.xlane.f32.xlu0 %v473_v3 }
  0x27   : > { %v695_v57 = vrot.slane %v2949_v55, %v499_v29 }
  0xaf   : > { %v472_v4 = vpop.xlane.xlu0 %471 }
  0xb0   : > { %v477_v5 = vmul.f32 0.03125, %v472_v4 }
  0xb2   : > { %v479_v6 = vsub.f32 %v467_v0, %v477_v5 }
  0xb3   : > { %v475_v7 = vpop.xlane.xlu0 %474 }
  0xb4   : > { %v478_v8 = vmul.f32 0.03125, %v475_v7  ;;  %v481_v9 = vmul.f32 %v479_v6, %v479_v6 }
  0xb6   : > { %v480_v10 = vsub.f32 %v468_v1, %v478_v8  ;;  %v483_v11 = vsel %vm469_vm0, %v481_v9, 0.0 }
  0xb7   : > { %484 = vadd.xlane.f32.xlu1 %v483_v11  ;;  %v2666_v11 = vpack.i.bf16 %v2901_v19, %v2892_v16 }
  0xb8   : > { %v482_v12 = vmul.f32 %v480_v10, %v480_v10 }
  0xba   : > { %v486_v13 = vsel %vm469_vm0, %v482_v12, 0.0 }
  0xbb   : > { %487 = vadd.xlane.f32.xlu1 %v486_v13 }
 0x144   : > { %v485_v21 = vpop.xlane.xlu1 %484 }
 0x145   : > { %v489_v22 = vmul.f32 0.03125, %v485_v21 }
 0x147   : > { %v491_v24 = vadd.f32 1e-12, %v489_v22 }
 0x148   : > { %v488_v25 = vpop.xlane.xlu1 %487 }
 0x149   : > { %2696 = vrsqrt.f32 %v491_v24  ;;  %v490_v26 = vmul.f32 0.03125, %v488_v25 }
 0x14b   : > { %v492_v28 = vadd.f32 1e-12, %v490_v26 }
 0x14d   : > { %2698 = vrsqrt.f32 %v492_v28 }
 0x153   : > { %v2697_v33 = vpop.eup %2696 }
 0x154   : > { %v495_v34 = vmul.f32 %v2697_v33, %v479_v6 }
 0x156   : > { %v501_v36 = vmul.f32 %v500_v32, %v495_v34 }
 0x157   : > { %v2699_v37 = vpop.eup %2698 }
 0x158   : > { %v496_v38 = vmul.f32 %v2699_v37, %v480_v10  ;;  %v2919_v39 = vadd.f32 %v506_v35, %v501_v36 }
 0x15a   : > { %v502_v40 = vmul.f32 %v500_v32, %v496_v38  ;;  %2384 = vmatprep.mubr.msk.f32.mxu0 %vm469_vm0, %v2919_v39 }
 0x15c   : > { %v2923_v41 = vadd.f32 %v506_v35, %v502_v40 }
 0x15e   : > { %2385 = vmatmul.mubr.msk.f32.vlgmr.msra.gmra.mrb[0].mxu0 %vm469_vm0, %v2923_v41 }
 0x231   : > { %v2386_v43 = vpop.f32.mrb[0].mxu0 }
 0x232   : > { %v598_v44 = vadd.f32 %v2386_v43, %v2259_v42  ;;  %v592_v45 = vpop.f32.mrb[1].mxu0 }
 0x233   : > { %v593_v46 = vadd.f32 %v2259_v42, %v592_v45 }
 0x235   : > { %2391 = vmatprep.mubr.msk.f32.mxu1 %vm469_vm0, %v593_v46  ;;  %v2651_v47 = vpack.i.bf16 %v598_v44, %v593_v46 }
 0x237   : > { %2652 = vrot.lane.b32.xlu0 %v2651_v47, %s2769_s22 }
 0x23b   : > { %2662 = vrot.lane.b32.xlu0 %v2661_v17, %s2771_s28 }
 0x23f   : > { %2667 = vrot.lane.b32.xlu0 %v2666_v11, %s2771_s28 }
 0x243   : > { %824 = vrot.lane.b32.xlu0 %v2259_v42, %s2771_s28 }
 0x2a9   : > { %v2653_v48 = vpop.permute.xlu0 %2652 }
 0x2aa   : > { %v2655_v49 = vunpack.i.h.bf16 %v2653_v48  ;;  %v2654_v50 = vunpack.i.l.bf16 %v2653_v48 }
 0x2ac   : > { %v2540_v52 = vpack.c.bf16 %v2655_v49, %v2654_v50 }
 0x2ad   : > { %v2663_v18 = vpop.permute.xlu0 %2662 }
 0x2ae   : > { %2542 = vmatprep.subr.msk.bf16.mxu1 %vm2934_vm1, %v2540_v52  ;;  %v2665_v20 = vunpack.i.h.bf16 %v2663_v18  ;;  %v2664_v21 = vunpack.i.l.bf16 %v2663_v18 }
 0x2af   : > { %2545 = vmatpush3.bf16.xpose.msk.msra.mxu1 %vm2934_vm1, %v2540_v52 }
 0x2b0   : > { %v2550_v26 = vpack.c.bf16 %v2665_v20, %v2664_v21 }
 0x2b1   : > { %v2668_v14 = vpop.permute.xlu0 %2667 }
 0x2b2   : > { %v2670_v17 = vunpack.i.h.bf16 %v2668_v14  ;;  %v2669_v28 = vunpack.i.l.bf16 %v2668_v14  ;;  %2551 = vmatprep.subr.bf16.mxu1 %v2550_v26  ;;  %v1060_v14 = vld [vmem:[%s3218_s8 + $0x10] sm:$0xff] }
 0x2b4   : > { %v2554_v16 = vpack.c.bf16 %v2670_v17, %v2669_v28  ;;  %v1062_v28 = vld [vmem:[%s3218_s8 + $0x20] sm:$0xff] }
 0x2b5   : > { %v825_v36 = vpop.permute.xlu0 %824 }
 0x2b6   : > { %2392 = vmatmul.mubr.msk.f32.vlgmr.msra.gmra.mrb[0].mxu1 %vm469_vm0, %v598_v44 }
 0x2b7   : > { %2553 = vmatpush3.bf16.msra.mxu1 %v2550_v26 }
 0x2b8   : > { %2555 = vmatprep.subr.bf16.mxu1 %v2554_v16 }
 0x2bb   : > { %2557 = vmatpush3.bf16.msra.mxu1 %v2554_v16  ;;  %v1063_v16 = vld [vmem:[%s3218_s8 + $0x28] sm:$0xff] }
 0x389   : > { %v2393_v56 = vpop.f32.mrb[0].mxu1 }
 0x38a   : > { %v681_v58 = vpop.f32.mrb[1].mxu1  ;;  %v691_v59 = vmul.f32 0.17677669, %v2393_v56 }
 0x38b   : > { %v690_v60 = vmul.f32 0.17677669, %v681_v58  ;;  %v950_v58 = vld [vmem:[%s3217_s7 + $0x8] sm:$0xff] }
 0x38c   : > { %v697_v63 = vadd.f32 %v695_v57, %v691_v59 }
 0x38d   : > { %v696_v61 = vadd.f32 %v695_v57, %v690_v60  ;;  %v951_v60 = vld [vmem:[%s3217_s7 + $0x10] sm:$0xff] }
 0x38e   : > { %v702_v0 = vsel %vm698_vm2, %v697_v63, -inf }
 0x38f   : > { %v699_v62 = vsel %vm698_vm2, %v696_v61, -inf }
 0x390   : > { %700 = vmax.xlane.f32.xlu1 %v699_v62 }
 0x394   : > { %703 = vmax.xlane.f32.xlu1 %v702_v0 }
 0x41d   : > { %v701_v1 = vpop.xlane.xlu1 %700 }
 0x41e   : > { %v705_v2 = vsub.f32 %v696_v61, %v701_v1  ;;  %v952_v61 = vld [vmem:[%s3217_s7 + $0x18] sm:$0xff] }
 0x41f   : > { %v2562_v62 = vpack.c.bf16 %v952_v61, %v951_v60 }
 0x420   : > { %v707_v5 = vmul.f32 1.442695, %v705_v2 }
 0x421   : > { %v704_v3 = vpop.xlane.xlu1 %703 }
 0x422   : > { %v706_v4 = vsub.f32 %v697_v63, %v704_v3 }
 0x424   : > { %v709_v6 = vmul.f32 1.442695, %v706_v4 }
 0x426   : > { %2700 = vpow2.f32 %v709_v6  ;;  %v944_v6 = vsub.s32 3, %v2906_v27 }
 0x427   : > { %2702 = vpow2.f32 %v707_v5  ;;  %v938_v5 = vsub.s32 2, %v2906_v27 }
 0x430   : > { %v2701_v7 = vpop.eup %2700 }
 0x431   : > { %v714_v8 = vsel %vm698_vm2, %v2701_v7, 0.0  ;;  %v2703_v9 = vpop.eup %2702 }
 0x432   : > { %715 = vadd.xlane.f32.xlu1 %v714_v8  ;;  %v711_v10 = vsel %vm698_vm2, %v2703_v9, 0.0 }
 0x436   : > { %712 = vadd.xlane.f32.xlu1 %v711_v10  ;;  %v945_v10 = vrot.slane %v2912_v30, %v944_v6 }
 0x447   : > { %2657 = vrot.lane.b32.xlu1 %v2651_v47, %s2770_s27 }
 0x4bf   : > { %v716_v12 = vpop.xlane.xlu1 %715 }
 0x4c0   : > { %2704 = vrcp.f32 %v716_v12 }
 0x4c3   : > { %v713_v13 = vpop.xlane.xlu1 %712 }
 0x4c4   : > { %2706 = vrcp.f32 %v713_v13 }
 0x4c7   : > { %v2658_v22 = vpop.permute.xlu1 %2657 }
 0x4c8   : > { %v2660_v24 = vunpack.i.h.bf16 %v2658_v22  ;;  %v2659_v25 = vunpack.i.l.bf16 %v2658_v22  ;;  %v2270_v22 = vld [vmem:[%s3219_s9] ss:$0 sm:$0xff] }
 0x4ca   : > { %v2546_v15 = vpack.c.bf16 %v2660_v24, %v2659_v25  ;;  %v2705_v19 = vpop.eup %2704  ;;  %v1058_v24 = vld [vmem:[%s3218_s8] sm:$0xff]  ;;  %v1059_v25 = vld [vmem:[%s3218_s8 + $0x8] sm:$0xff] }
 0x4cb   : > { %v720_v33 = vmul.f32 %v2705_v19, %v2701_v7  ;;  %v939_v7 = vrot.slane %v2912_v30, %v938_v5  ;;  %v2566_v26 = vpack.c.bf16 %v1059_v25, %v1058_v24  ;;  %v2574_v19 = vpack.c.bf16 %v1063_v16, %v1062_v28  ;;  %v3046_v24 = vld [vmem:[%s3220_s10 + $0x10] sm:$0xff] }
 0x4cc   : > { %2547 = vmatprep.subr.bf16.mxu0 %v2546_v15 }
 0x4cd   : > { %2549 = vmatpush3.bf16.msra.mxu0 %v2546_v15  ;;  %2567 = vmatprep.subr.bf16.mxu1 %v2566_v26  ;;  %v1061_v15 = vld [vmem:[%s3218_s8 + $0x18] sm:$0xff] }
 0x4ce   : > { %v2707_v29 = vpop.eup %2706  ;;  %v2570_v17 = vpack.c.bf16 %v1061_v15, %v1060_v14 }
 0x4cf   : > { %v719_v32 = vmul.f32 %v2707_v29, %v2703_v9  ;;  %v1064_v29 = vld [vmem:[%s3218_s8 + $0x30] sm:$0xff] }
 0x4d1   : > { %2398 = vmatprep.mubr.msk.f32.mxu0 %vm698_vm2, %v719_v32  ;;  %v1065_v32 = vld [vmem:[%s3218_s8 + $0x38] sm:$0xff] }
 0x4d2   : > { %2399 = vmatmul.mubr.msk.f32.vlgmr.msra.gmra.mrb[2].mxu0 %vm698_vm2, %v720_v33  ;;  %v2578_v33 = vpack.c.bf16 %v1065_v32, %v1064_v29  ;;  %v1192_v29 = vand.u32 127, %v497_v23  ;;  %v1198_v32 = vstv %s1197_s17  ;;  %s2775_s17 = smov 2  }
 0x4d4   : > { %vm1199_vm6 = vcmp.eq.s32.totalorder %v1192_v29, %v1198_v32 }
 0x4d5   : > { %vm1200_vm9 = vmand %vm1195_vm5, %vm1199_vm6  ;;  %vm1559_vm5 = vcmask 125952   ;;  %vm1736_vm6 = vcmask 257024  }
 0x5a5   : > { %v2400_v34 = vpop.f32.mrb[2].mxu0 }
 0x5a6   : > { %v799_v35 = vpop.f32.mrb[3].mxu0 }
 0x5a7   : > { %2409 = vmatprep.mubr.msk.f32.mxu1 %vm469_vm0, %v799_v35 }
 0x5a8   : > { %2410 = vmatmul.mubr.msk.f32.vlgmr.msra.gmra.mrb[2].mxu1 %vm469_vm0, %v2400_v34 }
 0x5a9   : > { %2569 = vmatpush3.bf16.msra.mxu1 %v2566_v26  ;;  %v3055_v26 = vld [vmem:[%s3220_s10 + $0x18] sm:$0xff] }
 0x5aa   : > { %2571 = vmatprep.subr.bf16.mxu1 %v2570_v17  ;;  %v3059_v14 = vpack.i.bf16 %v3055_v26, %v3046_v24 }
 0x5ad   : > { %2573 = vmatpush3.bf16.msra.mxu1 %v2570_v17 }
 0x5ae   : > { %2575 = vmatprep.subr.bf16.mxu1 %v2574_v19 }
 0x5b1   : > { %2577 = vmatpush3.bf16.msra.mxu1 %v2574_v19 }
 0x5b2   : > { %2579 = vmatprep.subr.bf16.mxu1 %v2578_v33 }
 0x5b5   : > { %2581 = vmatpush3.bf16.msra.mxu1 %v2578_v33 }
 0x67b   : > { %v2411_v37 = vpop.f32.mrb[2].mxu1 }
 0x67c   : > { %v905_v38 = vadd.f32 %v2411_v37, %v825_v36  ;;  %v899_v40 = vpop.f32.mrb[3].mxu1 }
 0x67d   : > { %v900_v42 = vadd.f32 %v899_v40, %v825_v36 }
 0x67e   : > { %v909_v43 = vadd.f32 %v905_v38, %v2923_v41 }
 0x67f   : > { %v908_v44 = vadd.f32 %v900_v42, %v2919_v39  ;;  %v949_v39 = vld [vmem:[%s3217_s7] sm:$0xff] }
 0x680   : > { %v913_v45 = vsel %vm469_vm0, %v909_v43, 0.0  ;;  %v2558_v59 = vpack.c.bf16 %v950_v58, %v949_v39 }
 0x681   : > { %914 = vadd.xlane.f32.xlu0 %v913_v45  ;;  %v910_v46 = vsel %vm469_vm0, %v908_v44, 0.0 }
 0x682   : > { %911 = vadd.xlane.f32.xlu1 %v910_v46  ;;  %2559 = vmatprep.subr.bf16.mxu0 %v2558_v59 }
 0x683   : > { %2561 = vmatpush3.bf16.msra.mxu0 %v2558_v59 }
 0x684   : > { %2563 = vmatprep.subr.bf16.mxu0 %v2562_v62 }
 0x687   : > { %2565 = vmatpush3.bf16.msra.mxu0 %v2562_v62 }
 0x693   : > { %1066 = vrot.lane.b32.xlu1 %v2270_v22, %s2770_s27  ;;  %s1220_s27 = sadd.s32 3, %s2275_s15 }
 0x694   : > { %s1221_s25 = sld [smem:[#allocation3 + %s1220_s27]]  ;;  %s2778_s27 = smov 18  }
 0x70e   : > { %v915_v47 = vpop.xlane.xlu0 %914 }
 0x70f   : > { %v917_v48 = vmul.f32 0.03125, %v915_v47  ;;  %v912_v49 = vpop.xlane.xlu1 %911 }
 0x710   : > { %v916_v50 = vmul.f32 0.03125, %v912_v49 }
 0x711   : > { %v919_v52 = vsub.f32 %v909_v43, %v917_v48 }
 0x712   : > { %v918_v53 = vsub.f32 %v908_v44, %v916_v50 }
 0x713   : > { %v921_v57 = vmul.f32 %v919_v52, %v919_v52  ;;  %v1067_v58 = vpop.permute.xlu1 %1066 }
 0x714   : > { %v920_v54 = vmul.f32 %v918_v53, %v918_v53 }
 0x715   : > { %v925_v41 = vsel %vm469_vm0, %v921_v57, 0.0 }
 0x716   : > { %v922_v56 = vsel %vm469_vm0, %v920_v54, 0.0 }
 0x717   : > { %923 = vadd.xlane.f32.xlu0 %v922_v56 }
 0x71b   : > { %926 = vadd.xlane.f32.xlu0 %v925_v41 }
 0x7a4   : > { %v924_v63 = vpop.xlane.xlu0 %923 }
 0x7a5   : > { %v928_v0 = vmul.f32 0.03125, %v924_v63 }
 0x7a7   : > { %v930_v1 = vadd.f32 1e-12, %v928_v0 }
 0x7a8   : > { %v927_v2 = vpop.xlane.xlu0 %926 }
 0x7a9   : > { %2708 = vrsqrt.f32 %v930_v1  ;;  %v929_v3 = vmul.f32 0.03125, %v927_v2 }
 0x7ab   : > { %v931_v4 = vadd.f32 1e-12, %v929_v3 }
 0x7ad   : > { %2710 = vrsqrt.f32 %v931_v4 }
 0x7b3   : > { %v2709_v8 = vpop.eup %2708 }
 0x7b4   : > { %v934_v9 = vmul.f32 %v2709_v8, %v918_v53 }
 0x7b6   : > { %v940_v11 = vmul.f32 %v939_v7, %v934_v9 }
 0x7b7   : > { %v2711_v12 = vpop.eup %2710 }
 0x7b8   : > { %v935_v13 = vmul.f32 %v2711_v12, %v919_v52  ;;  %v946_v18 = vadd.f32 %v945_v10, %v940_v11 }
 0x7ba   : > { %v941_v20 = vmul.f32 %v939_v7, %v935_v13  ;;  %2420 = vmatprep.mubr.msk.f32.mxu0 %vm469_vm0, %v946_v18 }
 0x7bc   : > { %v947_v21 = vadd.f32 %v945_v10, %v941_v20  ;;  %v2774_v20 = vmov 0.0  }
 0x7be   : > { %2421 = vmatmul.mubr.msk.f32.vlgmr.msra.gmra.mrb[4].mxu0 %vm469_vm0, %v947_v21 }
 0x7bf   : > { %2446 = vmatprep.mubr.msk.f32.mxu0 %vm2773_vm4, %v2774_v20 }
 0x891   : > { %v2422_v34 = vpop.f32.mrb[4].mxu0 }
 0x892   : > { %v1037_v35 = vadd.f32 %v2422_v34, %v2270_v22  ;;  %v1031_v36 = vpop.f32.mrb[5].mxu0  ;;  %v1206_v34 = vstv %s1205_s20 }
 0x893   : > { %v1032_v37 = vadd.f32 %v2270_v22, %v1031_v36  ;;  %v3041_v22 = vld [vmem:[%s3220_s10 + $0x8] sm:$0xff]  ;;  %vm1207_vm8 = vcmp.eq.s32.totalorder %v1192_v29, %v1206_v34  ;;  %v1214_v36 = vstv %s1213_s24  ;;  %s2777_s24 = smov 126  }
 0x894   : > { %v1041_v38 = vmul.f32 %v1037_v35, %v1037_v35  ;;  %vm1208_vm10 = vmand %vm1203_vm7, %vm1207_vm8  ;;  %vm1215_vm12 = vcmp.eq.s32.totalorder %v1192_v29, %v1214_v36  ;;  %vm2164_vm7 = vcmask 273552   ;;  %vm2170_vm8 = vcmask 322832  }
 0x895   : > { %v1040_v40 = vmul.f32 %v1032_v37, %v1032_v37  ;;  %vm1216_vm13 = vmand %vm1211_vm11, %vm1215_vm12 }
 0x896   : > { %v1043_v42 = vmul.f32 %v1041_v38, %v1037_v35  ;;  %v1222_v38 = vstv %s1221_s25 }
 0x897   : > { %v1042_v43 = vmul.f32 %v1040_v40, %v1032_v37  ;;  %vm1223_vm15 = vcmp.eq.s32.totalorder %v1192_v29, %v1222_v38 }
 0x898   : > { %v1045_v44 = vmul.f32 0.044715, %v1043_v42  ;;  %v1187_v42 = vsub.s32 5, %v2906_v27 }
 0x899   : > { %v1044_v45 = vmul.f32 0.044715, %v1042_v43  ;;  %v1201_v43 = vsel %vm1200_vm9, 1.0, %v2774_v20  ;;  %vm2176_vm9 = vcmask 331072  }
 0x89a   : > { %v1047_v46 = vadd.f32 %v1045_v44, %v1037_v35  ;;  %v1209_v44 = vsel %vm1208_vm10, 1.0, %v2774_v20  ;;  %vm2182_vm10 = vcmask 339272  }
 0x89b   : > { %v1046_v47 = vadd.f32 %v1044_v45, %v1032_v37 }
 0x89c   : > { %v1049_v48 = vmul.f32 0.7978846, %v1047_v46  ;;  %v1210_v46 = vadd.f32 %v1209_v44, %v1201_v43 }
 0x89d   : > { %v1048_v49 = vmul.f32 0.7978846, %v1046_v47 }
 0x89e   : > { %2712 = vtanh.f32 %v1049_v48 }
 0x89f   : > { %2714 = vtanh.f32 %v1048_v49  ;;  %v1188_v49 = vrot.slane %v2912_v30, %v1187_v42 }
 0x8a8   : > { %v2713_v50 = vpop.eup %2712 }
 0x8a9   : > { %v2715_v52 = vpop.eup %2714  ;;  %v1053_v53 = vadd.f32 1.0, %v2713_v50  ;;  %v1217_v50 = vsel %vm1216_vm13, 1.0, %v2774_v20 }
 0x8aa   : > { %v1052_v54 = vadd.f32 1.0, %v2715_v52 }
 0x8ab   : > { %v1055_v56 = vmul.f32 0.5, %v1053_v53  ;;  %v1218_v53 = vadd.f32 %v1217_v50, %v1210_v46 }
 0x8ac   : > { %v1054_v57 = vmul.f32 0.5, %v1052_v54 }
 0x8ad   : > { %v1057_v39 = vmul.f32 %v1055_v56, %v1037_v35  ;;  %v1181_v35 = vsub.s32 4, %v2906_v27 }
 0x8ae   : > { %v1056_v41 = vmul.f32 %v1054_v57, %v1032_v37 }
 0x8af   : > { %v1182_v37 = vrot.slane %v2912_v30, %v1181_v35 }
 0x8b0   : > { %2439 = vmatprep.mubr.msk.f32.mxu1 %vm1069_vm3, %v1056_v41 }
 0x8b1   : > { %2440 = vmatmul.mubr.msk.f32.vlgmr.msra.gmra.mrb[4].mxu1 %vm1069_vm3, %v1057_v39  ;;  %vm1224_vm3 = vmand %vm1219_vm14, %vm1223_vm15 }
 0x8b2   : > { %2475 = vmatprep.mubr.msk.f32.mxu1 %vm2773_vm4, %v2774_v20  ;;  %v1225_v57 = vsel %vm1224_vm3, 1.0, %v2774_v20 }
 0x984   : > { %v2441_v59 = vpop.f32.mrb[4].mxu1 }
 0x985   : > { %v1142_v60 = vpop.f32.mrb[5].mxu1  ;;  %v1148_v61 = vadd.f32 %v2441_v59, %v1067_v58 }
 0x986   : > { %v1143_v62 = vadd.f32 %v1142_v60, %v1067_v58  ;;  %v1226_v58 = vadd.f32 %v1225_v57, %v1218_v53 }
 0x987   : > { %v1152_v1 = vadd.f32 %v1148_v61, %v947_v21  ;;  %v3036_v21 = vld [vmem:[%s3220_s10] sm:$0xff] }
 0x988   : > { %v1151_v63 = vadd.f32 %v1143_v62, %v946_v18  ;;  %v2772_v18 = vmov 0.0|0.0   ;;  %v3050_v25 = vpack.i.bf16 %v3041_v22, %v3036_v21  ;;  %v2586_v59 = vpack.c.bf16 %v3041_v22, %v3036_v21 }
 0x989   : > { %v1156_v2 = vsel %vm469_vm0, %v1152_v1, 0.0  ;;  %2582 = vmatprep.subr.bf16.mxu0 %v2772_v18  ;;  %2599 = vmatprep.subr.bf16.mxu1 %v2772_v18  ;;  %v2589_v62 = vpack.c.bf16 %v3055_v26, %v3046_v24 }
 0x98a   : > { %v1153_v0 = vsel %vm469_vm0, %v1151_v63, 0.0  ;;  %2672 = vrot.lane.b32.xlu1 %v3050_v25, %s2769_s22 }
 0x98b   : > { %1154 = vadd.xlane.f32.xlu0 %v1153_v0 }
 0x98f   : > { %1157 = vadd.xlane.f32.xlu0 %v1156_v2 }
 0x9fc   : > { %v2673_v39 = vpop.permute.xlu1 %2672 }
 0x9fd   : > { %v2675_v60 = vunpack.i.h.bf16 %v2673_v39  ;;  %v2674_v61 = vunpack.i.l.bf16 %v2673_v39  ;;  %v1760_v39 = vld [vmem:[%s3222_s12] sm:$0xff] }
 0xa18   : > { %v1155_v3 = vpop.xlane.xlu0 %1154 }
 0xa19   : > { %v1159_v4 = vmul.f32 0.03125, %v1155_v3 }
 0xa1b   : > { %v1161_v6 = vsub.f32 %v1151_v63, %v1159_v4  ;;  %v2591_v63 = vpack.c.bf16 %v2675_v60, %v2674_v61  ;;  %v1899_v60 = vld [vmem:[%s3221_s11] sm:$0xff]  ;;  %v1900_v61 = vld [vmem:[%s3221_s11 + $0x8] sm:$0xff] }
 0xa1c   : > { %v1158_v7 = vpop.xlane.xlu0 %1157 }
 0xa1d   : > { %v1160_v8 = vmul.f32 0.03125, %v1158_v7  ;;  %v1163_v9 = vmul.f32 %v1161_v6, %v1161_v6 }
 0xa1f   : > { %v1162_v10 = vsub.f32 %v1152_v1, %v1160_v8  ;;  %v1165_v11 = vsel %vm469_vm0, %v1163_v9, 0.0 }
 0xa20   : > { %1166 = vadd.xlane.f32.xlu0 %v1165_v11 }
 0xa21   : > { %v1164_v12 = vmul.f32 %v1162_v10, %v1162_v10 }
 0xa23   : > { %v1168_v13 = vsel %vm469_vm0, %v1164_v12, 0.0 }
 0xa24   : > { %1169 = vadd.xlane.f32.xlu0 %v1168_v13  ;;  %v1557_v13 = vrot.slane %v2949_v55, %v505_v31 }
 0xa3a   : > { %2677 = vrot.lane.b32.xlu0 %v3059_v14, %s2769_s22 }
 0xaad   : > { %v1167_v15 = vpop.xlane.xlu0 %1166 }
 0xaae   : > { %v1171_v17 = vmul.f32 0.03125, %v1167_v15 }
 0xab0   : > { %v1173_v28 = vadd.f32 1e-12, %v1171_v17 }
 0xab1   : > { %v1170_v16 = vpop.xlane.xlu0 %1169 }
 0xab2   : > { %2716 = vrsqrt.f32 %v1173_v28  ;;  %v1172_v19 = vmul.f32 0.03125, %v1170_v16 }
 0xab4   : > { %v1174_v33 = vadd.f32 1e-12, %v1172_v19 }
 0xab5   : > { %v2678_v0 = vpop.permute.xlu0 %2677 }
 0xab6   : > { %2718 = vrsqrt.f32 %v1174_v33  ;;  %v2680_v1 = vunpack.i.h.bf16 %v2678_v0  ;;  %v2679_v2 = vunpack.i.l.bf16 %v2678_v0  ;;  %v1763_v0 = vld [vmem:[%s3222_s12 + $0x18] sm:$0xff] }
 0xab8   : > { %v2595_v3 = vpack.c.bf16 %v2680_v1, %v2679_v2  ;;  %v1901_v2 = vld [vmem:[%s3221_s11 + $0x10] sm:$0xff] }
 0xabc   : > { %v2717_v23 = vpop.eup %2716 }
 0xabd   : > { %v1177_v40 = vmul.f32 %v2717_v23, %v1161_v6 }
 0xabf   : > { %v1183_v48 = vmul.f32 %v1182_v37, %v1177_v40 }
 0xac0   : > { %v2719_v45 = vpop.eup %2718 }
 0xac1   : > { %v1178_v47 = vmul.f32 %v2719_v45, %v1162_v10  ;;  %v1189_v54 = vadd.f32 %v1188_v49, %v1183_v48 }
 0xac3   : > { %v1184_v52 = vmul.f32 %v1182_v37, %v1178_v47 }
 0xac5   : > { %v1190_v56 = vadd.f32 %v1188_v49, %v1184_v52 }
 0xac7   : > { %v3079_v41 = vpack.c.bf16 %v1190_v56, %v1189_v54 }
 0xac9   : > { %2584 = vmatpush3.bf16.msra.mxu0 %v3079_v41 }
 0xaca   : > { %2585 = vmatprep.subr.bf16.mxu0 %v2772_v18 }
 0xacc   : > { %2447 = vmatmul.mubr.msk.f32.vlgmr.msra.gmra.mrb[6].mxu0 %vm698_vm2, %v1226_v58  ;;  %v1761_v58 = vld [vmem:[%s3222_s12 + $0x8] sm:$0xff] }
 0xacd   : > { %2587 = vmatpush3.bf16.msra.mxu0 %v2586_v59  ;;  %2457 = vmatprep.mubr.msk.f32.mxu0 %vm2773_vm4, %v2774_v20  ;;  %v2613_v59 = vpack.c.bf16 %v1761_v58, %v1760_v39 }
 0xace   : > { %2588 = vmatprep.subr.bf16.mxu0 %v2772_v18 }
 0xad1   : > { %2590 = vmatpush3.bf16.msra.mxu0 %v2589_v62  ;;  %v2619_v62 = vpack.c.bf16 %v1900_v61, %v1899_v60 }
 0xad2   : > { %2592 = vmatprep.subr.bf16.mxu0 %v2591_v63 }
 0xb9f   : > { %v3091_v4 = vpop.f32.mrb[6].mxu0 }
 0xba0   : > { %v2448_v6 = vpop.f32.mrb[7].mxu0  ;;  %2458 = vmatmul.mubr.msk.f32.vlgmr.msra.gmra.mrb[8].mxu0 %vm469_vm0, %v3091_v4 }
 0xba1   : > { %2594 = vmatpush3.bf16.msra.mxu0 %v2591_v63  ;;  %2468 = vmatprep.mubr.msk.f32.mxu0 %vm469_vm0, %v1189_v54  ;;  %v1762_v63 = vld [vmem:[%s3222_s12 + $0x10] sm:$0xff] }
 0xba2   : > { %2596 = vmatprep.subr.bf16.mxu0 %v2595_v3  ;;  %v2616_v1 = vpack.c.bf16 %v1763_v0, %v1762_v63 }
 0xba5   : > { %2598 = vmatpush3.bf16.msra.mxu0 %v2595_v3  ;;  %v1902_v3 = vld [vmem:[%s3221_s11 + $0x18] sm:$0xff] }
 0xba6   : > { %2603 = vmatprep.subr.bf16.mxu0 %v2772_v18  ;;  %v2622_v6 = vpack.c.bf16 %v1902_v3, %v1901_v2 }
 0xba8   : > { %2469 = vmatmul.mubr.msk.f32.vlgmr.msra.gmra.mrb[10].mxu0 %vm469_vm0, %v1190_v56 }
 0xba9   : > { %2482 = vmatprep.mubr.msk.f32.mxu0 %vm2773_vm4, %v2774_v20 }
 0xc73   : > { %v1373_v7 = vpop.f32.mrb[8].mxu0 }
 0xc74   : > { %v2459_v8 = vpop.f32.mrb[9].mxu0 }
 0xc7b   : > { %v2470_v9 = vpop.f32.mrb[10].mxu0 }
 0xc7c   : > { %v1465_v10 = vpop.f32.mrb[11].mxu0 }
 0xc7d   : > { %v2681_v11 = vpack.i.bf16 %v2470_v9, %v1465_v10  ;;  %v2600_v12 = vpack.c.bf16 %v2470_v9, %v1465_v10 }
 0xc7f   : > { %2602 = vmatpush3.bf16.xpose.msk.msra.mxu1 %vm2934_vm1, %v2600_v12 }
 0xc80   : > { %2606 = vmatprep.subr.bf16.mxu1 %v2772_v18 }
 0xc86   : > { %2476 = vmatmul.mubr.msk.f32.vlgmr.msra.gmra.mrb[6].mxu1 %vm469_vm0, %v1373_v7  ;;  %v3157_v7 = vld [vmem:[%s3213_s3] sm:$0xf] }
 0xc87   : > { %2493 = vmatprep.mubr.msk.f32.mxu1 %vm2773_vm4, %v2774_v20  ;;  %v2287_v8 = vadd.f32 -1.0, %v3157_v7  ;;  %v1892_v58 = vsub.f32 1.0, %v3157_v7 }
 0xc89   : > { %v1858_v9 = vmul.f32 1e+09, %v2287_v8 }
 0xd59   : > { %v1549_v21 = vpop.f32.mrb[6].mxu1 }
 0xd5a   : > { %v1553_v22 = vmul.f32 0.17677669, %v1549_v21  ;;  %v2477_v24 = vpop.f32.mrb[7].mxu1  ;;  %v1757_v21 = vsub.s32 7, %v2906_v27 }
 0xd5c   : > { %v1558_v26 = vadd.f32 %v1557_v13, %v1553_v22  ;;  %v1752_v13 = vsub.s32 6, %v2906_v27 }
 0xd5e   : > { %v1560_v15 = vsel %vm1559_vm5, %v1558_v26, -inf }
 0xd5f   : > { %1561 = vmax.xlane.f32.xlu1 %v1560_v15 }
 0xd70   : > { %2682 = vrot.lane.b32.xlu1 %v2681_v11, %s2769_s22 }
 0xd74   : > { %2692 = vrot.lane.b32.xlu1 %v3059_v14, %s2771_s28 }
 0xdec   : > { %v1562_v17 = vpop.xlane.xlu1 %1561 }
 0xded   : > { %v1563_v28 = vsub.f32 %v1558_v26, %v1562_v17  ;;  %v1758_v26 = vrot.slane %v2912_v30, %v1757_v21 }
 0xdef   : > { %v1564_v16 = vmul.f32 1.442695, %v1563_v28 }
 0xdf0   : > { %v2683_v19 = vpop.permute.xlu1 %2682 }
 0xdf1   : > { %2720 = vpow2.f32 %v1564_v16  ;;  %v2685_v29 = vunpack.i.h.bf16 %v2683_v19  ;;  %v2684_v32 = vunpack.i.l.bf16 %v2683_v19 }
 0xdf3   : > { %v2604_v33 = vpack.c.bf16 %v2685_v29, %v2684_v32  ;;  %v2285_v29 = vld [vmem:[%s3223_s13] ss:$0 sm:$0xff] }
 0xdf4   : > { %v2693_v36 = vpop.permute.xlu1 %2692 }
 0xdf5   : > { %2605 = vmatpush3.bf16.msra.mxu0 %v2604_v33  ;;  %v2695_v40 = vunpack.i.h.bf16 %v2693_v36  ;;  %v2694_v42 = vunpack.i.l.bf16 %v2693_v36 }
 0xdf6   : > { %2612 = vmatprep.subr.bf16.mxu0 %v2772_v18 }
 0xdf7   : > { %v2610_v44 = vpack.c.bf16 %v2695_v40, %v2694_v42 }
 0xdfb   : > { %v2721_v31 = vpop.eup %2720 }
 0xdfc   : > { %v1566_v34 = vsel %vm1559_vm5, %v2721_v31, 0.0 }
 0xdfd   : > { %1567 = vadd.xlane.f32.xlu0 %v1566_v34 }
 0xe13   : > { %2687 = vrot.lane.b32.xlu0 %v3050_v25, %s2771_s28 }
 0xe8a   : > { %v1568_v35 = vpop.xlane.xlu0 %1567 }
 0xe8b   : > { %2722 = vrcp.f32 %v1568_v35 }
 0xe8e   : > { %v2688_v23 = vpop.permute.xlu0 %2687 }
 0xe8f   : > { %v2690_v37 = vunpack.i.h.bf16 %v2688_v23  ;;  %v2689_v38 = vunpack.i.l.bf16 %v2688_v23 }
 0xe91   : > { %v2607_v43 = vpack.c.bf16 %v2690_v37, %v2689_v38 }
 0xe93   : > { %2608 = vmatpush3.bf16.msra.mxu1 %v2607_v43 }
 0xe94   : > { %2609 = vmatprep.subr.bf16.mxu1 %v2772_v18 }
 0xe95   : > { %v2723_v45 = vpop.eup %2722 }
 0xe96   : > { %v1570_v46 = vmul.f32 %v2723_v45, %v2721_v31 }
 0xe97   : > { %2611 = vmatpush3.bf16.msra.mxu1 %v2610_v44 }
 0xe98   : > { %2483 = vmatmul.mubr.msk.f32.vlgmr.msra.gmra.mrb[12].mxu0 %vm698_vm2, %v1570_v46  ;;  %2618 = vmatprep.subr.bf16.mxu1 %v2772_v18  ;;  %vm1864_vm2 = vcmask 60432  }
 0xe99   : > { %2504 = vmatprep.mubr.msk.f32.mxu0 %vm2773_vm4, %v2774_v20  ;;  %2614 = vmatpush3.bf16.msra.mxu0 %v2613_v59 }
 0xe9a   : > { %2615 = vmatprep.subr.bf16.mxu0 %v2772_v18 }
 0xe9d   : > { %2617 = vmatpush3.bf16.msra.mxu0 %v2616_v1 }
 0xe9e   : > { %2624 = vmatprep.subr.bf16.mxu0 %v2772_v18 }
 0xf6b   : > { %v1646_v25 = vpop.f32.mrb[12].mxu0 }
 0xf6c   : > { %v2484_v14 = vpop.f32.mrb[13].mxu0  ;;  %2494 = vmatmul.mubr.msk.f32.vlgmr.msra.gmra.mrb[8].mxu1 %vm469_vm0, %v1646_v25 }
 0xf6d   : > { %2515 = vmatprep.mubr.msk.f32.mxu1 %vm2773_vm4, %v2774_v20  ;;  %2620 = vmatpush3.bf16.msra.mxu1 %v2619_v62 }
 0xf6e   : > { %2621 = vmatprep.subr.bf16.mxu1 %v2772_v18 }
 0xf71   : > { %2623 = vmatpush3.bf16.msra.mxu1 %v2622_v6 }
 0xf72   : > { %2628 = vmatprep.subr.bf16.mxu1 %v2772_v18  ;;  %v1753_v18 = vrot.slane %v2912_v30, %v1752_v13 }
0x103f   : > { %v1731_v47 = vpop.f32.mrb[8].mxu1 }
0x1040   : > { %v1735_v48 = vadd.f32 %v1731_v47, %v3091_v4  ;;  %v2495_v49 = vpop.f32.mrb[9].mxu1 }
0x1042   : > { %v1737_v50 = vsel %vm1736_vm6, %v1735_v48, 0.0 }
0x1043   : > { %1738 = vadd.xlane.f32.xlu1 %v1737_v50 }
0x10d0   : > { %v1739_v52 = vpop.xlane.xlu1 %1738 }
0x10d1   : > { %v1740_v53 = vmul.f32 0.03125, %v1739_v52 }
0x10d3   : > { %v1741_v54 = vsub.f32 %v1735_v48, %v1740_v53 }
0x10d5   : > { %v1742_v56 = vmul.f32 %v1741_v54, %v1741_v54 }
0x10d7   : > { %v1743_v57 = vsel %vm1736_vm6, %v1742_v56, 0.0 }
0x10d8   : > { %1744 = vadd.xlane.f32.xlu0 %v1743_v57 }
0x10ee   : > { %1860 = vrot.lane.b32.xlu0 %v1858_v9, %s2775_s17 }
0x1165   : > { %v1745_v10 = vpop.xlane.xlu0 %1744 }
0x1166   : > { %v1746_v11 = vmul.f32 0.03125, %v1745_v10 }
0x1168   : > { %v1747_v12 = vadd.f32 1e-12, %v1746_v11 }
0x1169   : > { %v1861_v33 = vpop.permute.xlu0 %1860 }
0x116a   : > { %2724 = vrsqrt.f32 %v1747_v12 }
0x1174   : > { %v2725_v22 = vpop.eup %2724 }
0x1175   : > { %v1749_v24 = vmul.f32 %v2725_v22, %v1741_v54 }
0x1177   : > { %v1754_v15 = vmul.f32 %v1753_v18, %v1749_v24 }
0x1179   : > { %v1759_v17 = vadd.f32 %v1758_v26, %v1754_v15 }
0x117b   : > { %2505 = vmatmul.mubr.msk.f32.vlgmr.msra.gmra.mrb[14].mxu0 %vm469_vm0, %v1759_v17  ;;  %v1898_v28 = vadd.f32 %v1759_v17, %v3091_v4 }
0x117c   : > { %2627 = vmatpush3.bf16.xpose.msk.msra.mxu0 %vm2934_vm1, %v3079_v41  ;;  %2522 = vmatprep.mubr.msk.f32.mxu0 %vm2773_vm4, %v2774_v20 }
0x117d   : > { %2516 = vmatmul.mubr.msk.f32.vlgmr.msra.gmra.mrb[10].mxu1 %vm469_vm0, %v1898_v28 }
0x117e   : > { %2631 = vmatpush3.bf16.xpose.msk.msra.mxu1 %vm2934_vm1, %v3079_v41  ;;  %2529 = vmatprep.mubr.msk.f32.mxu1 %vm2773_vm4, %v2774_v20  ;;  %v2053_v20 = vrot.slane %v2949_v55, %v938_v5  ;;  %vm1844_vm1 = vcmask 11264   ;;  %vm2158_vm4 = vcmask 142352  }
0x124e   : > { %v1840_v30 = vpop.f32.mrb[14].mxu0 }
0x124f   : > { %v2506_v16 = vpop.f32.mrb[15].mxu0  ;;  %v1841_v32 = vadd.f32 %v2285_v29, %v1840_v30 }
0x1250   : > { %v1972_v19 = vpop.f32.mrb[10].mxu1 }
0x1251   : > { %2066 = vrot.lane.b32.xlu1 %v1972_v19, %s2769_s22  ;;  %v2517_v4 = vpop.f32.mrb[11].mxu1  ;;  %2523 = vmatmul.mubr.msk.f32.vlgmr.msra.gmra.mrb[16].mxu0 %vm469_vm0, %v1972_v19  ;;  %v1863_v31 = vadd.f32 %v1861_v33, %v1841_v32  ;;  %v1845_v38 = vsel %vm1844_vm1, %v1841_v32, -inf  ;;  %s2776_s22 = smov 3   ;;  %v2288_v62 = vmul.f32 -1.442695, %v1841_v32 }
0x1253   : > { %v1865_v51 = vsel %vm1864_vm2, %v1863_v31, -inf }
0x1275   : > { %1866 = vmax.xlane.f32.xlu1 %v1865_v51 }
0x12c3   : > { %v2067_v41 = vpop.permute.xlu1 %2066 }
0x12c4   : > { %2530 = vmatmul.mubr.msk.f32.vlgmr.msra.gmra.mrb[12].mxu1 %vm469_vm0, %v2067_v41  ;;  %vm1875_vm0 = vcmask 44032  }
0x1302   : > { %v1867_v42 = vpop.xlane.xlu1 %1866 }
0x1303   : > { %v1868_v5 = vsub.f32 %v1863_v31, %v1867_v42 }
0x1305   : > { %v1869_v45 = vmul.f32 1.442695, %v1868_v5 }
0x1307   : > { %2726 = vpow2.f32 %v1869_v45 }
0x1311   : > { %v2727_v46 = vpop.eup %2726 }
0x1324   : > { %v2045_v34 = vpop.f32.mrb[16].mxu0 }
0x1325   : > { %v2049_v35 = vmul.f32 0.17677669, %v2045_v34  ;;  %v2524_v36 = vpop.f32.mrb[17].mxu0 }
0x1327   : > { %v2054_v23 = vadd.f32 %v2053_v20, %v2049_v35 }
0x1329   : > { %v2055_v37 = vsel %vm1559_vm5, %v2054_v23, -inf }
0x132a   : > { %2056 = vmax.xlane.f32.xlu0 %v2055_v37 }
0x132e   : > { %1846 = vmax.xlane.f32.xlu0 %v1845_v38 }
0x1344   : > { %1888 = vrot.lane.b32.xlu0 %v3157_v7, %s2776_s22 }
0x1397   : > { %v2136_v40 = vpop.f32.mrb[12].mxu1 }
0x1398   : > { %v2140_v27 = vmul.f32 0.17677669, %v2136_v40  ;;  %v2531_v43 = vpop.f32.mrb[13].mxu1 }
0x139a   : > { %v2141_v55 = vadd.f32 %v2140_v27, %v2053_v20 }
0x139c   : > { %v2142_v44 = vsel %vm1559_vm5, %v2141_v55, -inf }
0x139d   : > { %2143 = vmax.xlane.f32.xlu1 %v2142_v44 }
0x13ae   : > { %1872 = vrot.lane.b32.xlu1 %v2727_v46, %s2777_s24 }
0x13b7   : > { %v2057_v25 = vpop.xlane.xlu0 %2056 }
0x13b8   : > { %v2058_v14 = vsub.f32 %v2054_v23, %v2057_v25 }
0x13ba   : > { %v2059_v47 = vmul.f32 1.442695, %v2058_v14 }
0x13bb   : > { %v1847_v59 = vpop.xlane.xlu0 %1846 }
0x13bc   : > { %2728 = vpow2.f32 %v2059_v47  ;;  %v1848_v60 = vsub.f32 %v1841_v32, %v1847_v59 }
0x13be   : > { %v1849_v61 = vmul.f32 1.442695, %v1848_v60 }
0x13bf   : > { %v1889_v6 = vpop.permute.xlu0 %1888 }
0x13c6   : > { %v2729_v48 = vpop.eup %2728 }
0x13c7   : > { %v2061_v49 = vsel %vm1559_vm5, %v2729_v48, 0.0 }
0x13c8   : > { %2062 = vadd.xlane.f32.xlu0 %v2061_v49 }
0x142a   : > { %v2144_v50 = vpop.xlane.xlu1 %2143 }
0x142b   : > { %v2145_v52 = vsub.f32 %v2141_v55, %v2144_v50 }
0x142d   : > { %v2146_v53 = vmul.f32 1.442695, %v2145_v52 }
0x142e   : > { %v1873_v54 = vpop.permute.xlu1 %1872 }
0x142f   : > { %2730 = vpow2.f32 %v2146_v53  ;;  %v1876_v56 = vsel %vm1875_vm0, %v1873_v54, 0.0 }
0x1430   : > { %1877 = vadd.xlane.f32.xlu1 %v1876_v56  ;;  %2732 = vpow2.f32 %v1849_v61 }
0x1431   : > { %2734 = vpow2.f32 %v2288_v62 }
0x1439   : > { %v2731_v57 = vpop.eup %2730 }
0x143a   : > { %v2148_v39 = vsel %vm1559_vm5, %v2731_v57, 0.0  ;;  %v2733_v63 = vpop.eup %2732 }
0x143b   : > { %2149 = vadd.xlane.f32.xlu0 %v2148_v39  ;;  %v1851_v0 = vsel %vm1844_vm1, %v2733_v63, 0.0  ;;  %v2735_v1 = vpop.eup %2734 }
0x143c   : > { %v1884_v2 = vadd.f32 1.0, %v2735_v1 }
0x143e   : > { %2736 = vrcp.f32 %v1884_v2 }
0x1448   : > { %v2737_v3 = vpop.eup %2736 }
0x1449   : > { %v1891_v24 = vmul.f32 %v2737_v3, %v1889_v6 }
0x1451   : > { %1894 = vrot.lane.b32.xlu0 %v1892_v58, %s2776_s22 }
0x1455   : > { %v2063_v7 = vpop.xlane.xlu0 %2062 }
0x1470   : > { %1852 = vadd.xlane.f32.xlu0 %v1851_v0 }
0x1486   : > { %2173 = vrot.lane.b32.xlu0 %v2737_v3, %s2771_s28 }
0x14bd   : > { %v1878_v8 = vpop.xlane.xlu1 %1877 }
0x14be   : > { %2738 = vrcp.f32 %v1878_v8 }
0x14bf   : > { %2740 = vrcp.f32 %v2063_v7 }
0x14c8   : > { %v2739_v9 = vpop.eup %2738  ;;  %v2150_v10 = vpop.xlane.xlu0 %2149 }
0x14c9   : > { %2742 = vrcp.f32 %v2150_v10  ;;  %v1880_v11 = vmul.f32 %v2739_v9, %v2727_v46  ;;  %v2741_v12 = vpop.eup %2740 }
0x14ca   : > { %v2065_v13 = vmul.f32 %v2741_v12, %v2729_v48 }
0x14cb   : > { %2167 = vrot.lane.b32.xlu1 %v1880_v11, %s2771_s28 }
0x14cc   : > { %v1895_v22 = vpop.permute.xlu0 %1894 }
0x14cd   : > { %v1897_v26 = vadd.f32 %v1895_v22, %v1891_v24 }
0x14cf   : > { %2155 = vrot.lane.b32.xlu1 %v2065_v13, %s2775_s17 }
0x14d3   : > { %v2743_v21 = vpop.eup %2742 }
0x14d4   : > { %v2152_v18 = vmul.f32 %v2743_v21, %v2731_v57 }
0x14d6   : > { %2161 = vrot.lane.b32.xlu1 %v2152_v18, %s2778_s27 }
0x14da   : > { %2179 = vrot.lane.b32.xlu1 %v1897_v26, %s2771_s28 }
0x14fd   : > { %v1853_v15 = vpop.xlane.xlu0 %1852 }
0x14fe   : > { %2744 = vrcp.f32 %v1853_v15 }
0x1501   : > { %v2174_v4 = vpop.permute.xlu0 %2173 }
0x1508   : > { %v2745_v17 = vpop.eup %2744 }
0x1509   : > { %v1855_v28 = vmul.f32 %v2745_v17, %v2733_v63 }
0x150b   : > { %2153 = vst.msk [vmem:[%s462_s26] sm:$0xf] %vm1844_vm1, %v1855_v28 }
0x153d   : > { %v2168_v30 = vpop.permute.xlu1 %2167 }
0x1541   : > { %v2156_v16 = vpop.permute.xlu1 %2155 }
0x1542   : > { %2159 = vst.msk [vmem:[%s462_s26] sm:$0xf] %vm2158_vm4, %v2156_v16 }
0x1548   : > { %v2162_v19 = vpop.permute.xlu1 %2161 }
0x1549   : > { %2165 = vst.msk [vmem:[%s462_s26] sm:$0xf] %vm2164_vm7, %v2162_v19 }
0x154a   : > { %2171 = vst.msk [vmem:[%s462_s26] sm:$0xf] %vm2170_vm8, %v2168_v30 }
0x154b   : > { %2177 = vst.msk [vmem:[%s462_s26] sm:$0xf] %vm2176_vm9, %v2174_v4 }
0x154c   : > { %v2180_v29 = vpop.permute.xlu1 %2179 }
0x154d   : > { %2183 = vst.msk [vmem:[%s462_s26] sm:$0xf] %vm2182_vm10, %v2180_v29 }
0x154e PF: > { %s30_s18 = sadd.s32 1, %s2766_s18  }
0x154f   : > { %p27_p9 = scmp.ge.s32.totalorder %s30_s18, 4  }
0x1551   :  { %29 = sbr.rel (!%p27_p9) target bundleno = 16 (0x10), region = 105 }

</bundles_post_ra>
